<compile_context>
chip_gen: v7x
topology: tpu7x:2x2x1
jax: 0.10.0
libtpu: 0.0.40
codegen_flags: <defaults>
</compile_context>

<pallas_src>
import functools

import jax
import jax.numpy as jnp
from jax.experimental import pallas as pl
from jax.experimental.pallas import tpu as pltpu

# Small, TPU-friendly stand-ins for EMBEDDING_DIM=300, HIDDEN_SIZE=512, VOCAB.
SEQ, BATCH, EMB, HIDDEN, VOCAB = 8, 8, 128, 128, 256
# Vocab tile for the epilogue Linear.  At real sizes use 2048-4096 on
# v5e/v6e (128 MiB VMEM) and a smaller tile under v7x's 64 MiB budget.
TILE_V = 128


def lstm_recurrence_kernel(x_ref, wih_ref, whh_ref, b_ref, hs_ref, preact_ref,
                           *, seq, batch):
    """Serial LSTM recurrence for all timesteps (single invocation, no grid).

    x_ref:      (S*B, E)  bf16 flattened time-major input
    wih_ref:    (E, 4H)   bf16
    whh_ref:    (H, 4H)   bf16
    b_ref:      (1, 4H)   f32   (b_ih + b_hh)
    hs_ref:     (S*B, H)  f32 output: hidden states for every step
    preact_ref: (S*B, 4H) f32 scratch: hoisted x@W_ih + b for all steps
    """
    H = whh_ref.shape[0]

    # ---- Prologue: hoisted, time-independent input projection (+ bias) ----
    preact_ref[...] = (
        jnp.dot(x_ref[...], wih_ref[...], preferred_element_type=jnp.float32)
        + b_ref[...])

    # ---- Recurrence: per step only h_prev @ W_hh + precomputed gates ------
    def step(t, carry):
        h, c = carry                                  # f32 recurrent state
        row = pl.multiple_of(t * batch, batch)        # sublane-aligned offset
        gates = (preact_ref[pl.ds(row, batch), :]
                 + jnp.dot(h.astype(jnp.bfloat16), whh_ref[...],
                           preferred_element_type=jnp.float32))
        # PyTorch gate order: input, forget, cell(g), output.
        i = jax.nn.sigmoid(gates[:, 0 * H:1 * H])
        f = jax.nn.sigmoid(gates[:, 1 * H:2 * H])
        g = jnp.tanh(gates[:, 2 * H:3 * H])
        o = jax.nn.sigmoid(gates[:, 3 * H:4 * H])
        c_new = f * c + i * g
        h_new = o * jnp.tanh(c_new)
        hs_ref[pl.ds(row, batch), :] = h_new
        return (h_new, c_new)

    h0 = jnp.zeros((batch, H), jnp.float32)
    c0 = jnp.zeros((batch, H), jnp.float32)
    # Partial unroll keeps vreg pressure bounded at real SEQ; full unroll here.
    jax.lax.fori_loop(0, seq, step, (h0, c0), unroll=min(seq, 8))


def output_linear_kernel(hs_ref, wout_ref, bout_ref, out_ref):
    """One VOCAB tile of the output projection: (S*B, H) @ (H, TILE_V)."""
    out_ref[...] = (
        jnp.dot(hs_ref[...].astype(jnp.bfloat16), wout_ref[...],
                preferred_element_type=jnp.float32)
        + bout_ref[...]).astype(out_ref.dtype)


def language_model_lstm(x, w_ih, w_hh, b, w_out, b_out, *, tile_v=TILE_V):
    S, B, E = x.shape
    H = w_hh.shape[0]
    V = w_out.shape[1]
    assert B % 8 == 0, "BATCH must be a multiple of 8 (sublane alignment)"
    assert H % 128 == 0, "HIDDEN must be a multiple of 128 (lane alignment)"
    assert tile_v % 128 == 0 and V % tile_v == 0, "VOCAB tiling misaligned"

    # bf16 MXU operands; biases stay f32 (added to the f32 accumulators).
    x2 = x.reshape(S * B, E).astype(jnp.bfloat16)
    wih = w_ih.astype(jnp.bfloat16)
    whh = w_hh.astype(jnp.bfloat16)
    wout = w_out.astype(jnp.bfloat16)

    # ---- Phase 1: serial recurrence (single invocation) --------------------
    rec_cost = pl.CostEstimate(
        flops=2 * S * B * E * 4 * H + 2 * S * B * H * 4 * H + 10 * S * B * H,
        transcendentals=5 * S * B * H,
        bytes_accessed=(x2.size * 2 + wih.size * 2 + whh.size * 2
                        + b.size * 4 + S * B * H * 4),
    )
    hs = pl.pallas_call(
        functools.partial(lstm_recurrence_kernel, seq=S, batch=B),
        out_shape=jax.ShapeDtypeStruct((S * B, H), jnp.float32),
        in_specs=[pl.BlockSpec(memory_space=pltpu.MemorySpace.VMEM)] * 4,
        out_specs=pl.BlockSpec(memory_space=pltpu.MemorySpace.VMEM),
        scratch_shapes=[pltpu.VMEM((S * B, 4 * H), jnp.float32)],
        compiler_params=pltpu.CompilerParams(
            vmem_limit_bytes=32 * 1024 * 1024),
        cost_estimate=rec_cost,
    )(x2, wih, whh, b)

    # ---- Phase 2: vocab-tiled output Linear (V axis parallel / megacore) ---
    lin_cost = pl.CostEstimate(
        flops=2 * S * B * H * V,
        transcendentals=0,
        bytes_accessed=(S * B * H * 4 + wout.size * 2 + b_out.size * 4
                        + S * B * V * 4),
    )
    out = pl.pallas_call(
        output_linear_kernel,
        out_shape=jax.ShapeDtypeStruct((S * B, V), jnp.float32),
        grid=(V // tile_v,),
        in_specs=[
            pl.BlockSpec((S * B, H), lambda j: (0, 0)),    # hs stays resident
            pl.BlockSpec((H, tile_v), lambda j: (0, j)),   # stream W_out tiles
            pl.BlockSpec((1, tile_v), lambda j: (0, j)),
        ],
        out_specs=pl.BlockSpec((S * B, tile_v), lambda j: (0, j)),
        compiler_params=pltpu.CompilerParams(
            dimension_semantics=("parallel",),
            vmem_limit_bytes=32 * 1024 * 1024),
        cost_estimate=lin_cost,
    )(hs, wout, b_out)
    return out


def reference_forward(x, w_ih, w_hh, b, w_out, b_out):
    """Pure-JAX reference with the same bf16 matmul operands / f32 state."""
    S, B, E = x.shape
    H = w_hh.shape[0]

    def bdot(a, m):
        return jnp.dot(a.astype(jnp.bfloat16), m.astype(jnp.bfloat16),
                       preferred_element_type=jnp.float32)

    def step(carry, x_t):
        h, c = carry
        gates = bdot(x_t, w_ih) + bdot(h, w_hh) + b[0]
        i = jax.nn.sigmoid(gates[:, 0 * H:1 * H])
        f = jax.nn.sigmoid(gates[:, 1 * H:2 * H])
        g = jnp.tanh(gates[:, 2 * H:3 * H])
        o = jax.nn.sigmoid(gates[:, 3 * H:4 * H])
        c = f * c + i * g
        h = o * jnp.tanh(c)
        return (h, c), h

    h0 = jnp.zeros((B, H), jnp.float32)
    c0 = jnp.zeros((B, H), jnp.float32)
    _, hs = jax.lax.scan(step, (h0, c0), x)          # (S, B, H)
    return bdot(hs.reshape(S * B, H), w_out) + b_out[0]


if __name__ == "__main__":
    key = jax.random.PRNGKey(0)
    kx, k1, k2, k3, k4, k5, k6 = jax.random.split(key, 7)

    # Deterministic PyTorch-style init: U(-1/sqrt(H), 1/sqrt(H)).
    kscale = 1.0 / jnp.sqrt(jnp.float32(HIDDEN))
    x = jax.random.normal(kx, (SEQ, BATCH, EMB), jnp.float32)
    w_ih = jax.random.uniform(k1, (EMB, 4 * HIDDEN), jnp.float32, -kscale, kscale)
    w_hh = jax.random.uniform(k2, (HIDDEN, 4 * HIDDEN), jnp.float32, -kscale, kscale)
    b_ih = jax.random.uniform(k3, (1, 4 * HIDDEN), jnp.float32, -kscale, kscale)
    b_hh = jax.random.uniform(k4, (1, 4 * HIDDEN), jnp.float32, -kscale, kscale)
    b = b_ih + b_hh
    w_out = jax.random.uniform(k5, (HIDDEN, VOCAB), jnp.float32, -kscale, kscale)
    b_out = jax.random.uniform(k6, (1, VOCAB), jnp.float32, -kscale, kscale)

    out = language_model_lstm(x, w_ih, w_hh, b, w_out, b_out)
    out = jax.block_until_ready(out)

    ref = reference_forward(x, w_ih, w_hh, b, w_out, b_out)
    assert out.shape == (SEQ * BATCH, VOCAB), out.shape
    # bf16 MXU operands -> compare against the bf16-matmul reference.
    assert jnp.allclose(out, ref, atol=5e-3, rtol=5e-3), "mismatch vs reference"

    print("KERNEL_OK")
</pallas_src>

<mosaic_0001>
module attributes {stable_mosaic.version = 11 : i64} {
  func.func @lstm_recurrence_kernel(%arg0: memref<64x128xbf16, #tpu.memory_space<vmem>>, %arg1: memref<128x512xbf16, #tpu.memory_space<vmem>>, %arg2: memref<128x512xbf16, #tpu.memory_space<vmem>>, %arg3: memref<1x512xf32, #tpu.memory_space<vmem>>, %arg4: memref<64x128xf32, #tpu.memory_space<vmem>>, %arg5: memref<64x512xf32, #tpu.memory_space<vmem>>) attributes {dimension_semantics = [], scalar_prefetch = 0 : i64, scratch_operands = 1 : i64, tpu.core_type = #tpu.core_type<tc>} {
    %c0 = arith.constant 0 : index
    %c0_0 = arith.constant 0 : index
    %0 = vector.load %arg0[%c0, %c0_0] : memref<64x128xbf16, #tpu.memory_space<vmem>>, vector<64x128xbf16>
    %c0_1 = arith.constant 0 : index
    %c0_2 = arith.constant 0 : index
    %1 = vector.load %arg1[%c0_1, %c0_2] : memref<128x512xbf16, #tpu.memory_space<vmem>>, vector<128x512xbf16>
    %cst = arith.constant dense<0.000000e+00> : vector<64x512xf32>
    %2 = tpu.matmul %0, %1, %cst {dimension_numbers = #tpu.dot_dimension_numbers<[1], [0], [0], [1], [0, 0, 1, 1], [], []>} : vector<64x128xbf16>, vector<128x512xbf16>, vector<64x512xf32> -> vector<64x512xf32>
    %c0_3 = arith.constant 0 : index
    %c0_4 = arith.constant 0 : index
    %3 = vector.load %arg3[%c0_3, %c0_4] : memref<1x512xf32, #tpu.memory_space<vmem>>, vector<1x512xf32>
    %4 = vector.broadcast %3 : vector<1x512xf32> to vector<64x512xf32>
    %5 = arith.addf %2, %4 : vector<64x512xf32>
    %c0_5 = arith.constant 0 : index
    %c0_6 = arith.constant 0 : index
    %6 = vector.load %arg5[%c0_5, %c0_6] : memref<64x512xf32, #tpu.memory_space<vmem>>, vector<64x512xf32>
    tpu.vector_store %arg5[%c0_5, %c0_6], %5 {strides = array<i32>} : memref<64x512xf32, #tpu.memory_space<vmem>>, vector<64x512xf32>,
    %cst_7 = arith.constant 0.000000e+00 : f32
    %7 = vector.broadcast %cst_7 : f32 to vector<8x128xf32>
    %cst_8 = arith.constant 0.000000e+00 : f32
    %8 = vector.broadcast %cst_8 : f32 to vector<8x128xf32>
    %c0_i32 = arith.constant 0 : i32
    %c8_i32 = arith.constant 8 : i32
    %9 = arith.muli %c0_i32, %c8_i32 : i32
    %10 = tpu.assume_multiple %9, 8 : i32
    %11 = arith.index_cast %10 : i32 to index
    %c0_9 = arith.constant 0 : index
    %12 = vector.load %arg5[%11, %c0_9] : memref<64x512xf32, #tpu.memory_space<vmem>>, vector<8x512xf32>
    %13 = arith.truncf %7 : vector<8x128xf32> to vector<8x128xbf16>
    %c0_10 = arith.constant 0 : index
    %c0_11 = arith.constant 0 : index
    %14 = vector.load %arg2[%c0_10, %c0_11] : memref<128x512xbf16, #tpu.memory_space<vmem>>, vector<128x512xbf16>
    %cst_12 = arith.constant dense<0.000000e+00> : vector<8x512xf32>
    %15 = tpu.matmul %13, %14, %cst_12 {dimension_numbers = #tpu.dot_dimension_numbers<[1], [0], [0], [1], [0, 0, 1, 1], [], []>} : vector<8x128xbf16>, vector<128x512xbf16>, vector<8x512xf32> -> vector<8x512xf32>
    %16 = arith.addf %12, %15 : vector<8x512xf32>
    %17 = vector.extract_strided_slice %16 {offsets = [0, 0], sizes = [8, 128], strides = [1, 1]} : vector<8x512xf32> to vector<8x128xf32>
    %18 = arith.negf %17 : vector<8x128xf32>
    %19 = math.exp %18 : vector<8x128xf32>
    %cst_13 = arith.constant 1.000000e+00 : f32
    %20 = vector.broadcast %cst_13 : f32 to vector<8x128xf32>
    %21 = arith.addf %20, %19 : vector<8x128xf32>
    %22 = arith.divf %20, %21 : vector<8x128xf32>
    %23 = vector.extract_strided_slice %16 {offsets = [0, 128], sizes = [8, 128], strides = [1, 1]} : vector<8x512xf32> to vector<8x128xf32>
    %24 = arith.negf %23 : vector<8x128xf32>
    %25 = math.exp %24 : vector<8x128xf32>
    %cst_14 = arith.constant 1.000000e+00 : f32
    %26 = vector.broadcast %cst_14 : f32 to vector<8x128xf32>
    %27 = arith.addf %26, %25 : vector<8x128xf32>
    %28 = arith.divf %26, %27 : vector<8x128xf32>
    %29 = vector.extract_strided_slice %16 {offsets = [0, 256], sizes = [8, 128], strides = [1, 1]} : vector<8x512xf32> to vector<8x128xf32>
    %30 = math.tanh %29 : vector<8x128xf32>
    %31 = vector.extract_strided_slice %16 {offsets = [0, 384], sizes = [8, 128], strides = [1, 1]} : vector<8x512xf32> to vector<8x128xf32>
    %32 = arith.negf %31 : vector<8x128xf32>
    %33 = math.exp %32 : vector<8x128xf32>
    %cst_15 = arith.constant 1.000000e+00 : f32
    %34 = vector.broadcast %cst_15 : f32 to vector<8x128xf32>
    %35 = arith.addf %34, %33 : vector<8x128xf32>
    %36 = arith.divf %34, %35 : vector<8x128xf32>
    %37 = arith.mulf %28, %8 : vector<8x128xf32>
    %38 = arith.mulf %22, %30 : vector<8x128xf32>
    %39 = arith.addf %37, %38 : vector<8x128xf32>
    %40 = math.tanh %39 : vector<8x128xf32>
    %41 = arith.mulf %36, %40 : vector<8x128xf32>
    %42 = arith.index_cast %10 : i32 to index
    %c0_16 = arith.constant 0 : index
    %43 = vector.load %arg4[%42, %c0_16] : memref<64x128xf32, #tpu.memory_space<vmem>>, vector<8x128xf32>
    tpu.vector_store %arg4[%42, %c0_16], %41 {strides = array<i32>} : memref<64x128xf32, #tpu.memory_space<vmem>>, vector<8x128xf32>,
    %c1_i32 = arith.constant 1 : i32
    %c8_i32_17 = arith.constant 8 : i32
    %44 = arith.muli %c1_i32, %c8_i32_17 : i32
    %45 = tpu.assume_multiple %44, 8 : i32
    %46 = arith.index_cast %45 : i32 to index
    %c0_18 = arith.constant 0 : index
    %47 = vector.load %arg5[%46, %c0_18] : memref<64x512xf32, #tpu.memory_space<vmem>>, vector<8x512xf32>
    %48 = arith.truncf %41 : vector<8x128xf32> to vector<8x128xbf16>
    %c0_19 = arith.constant 0 : index
    %c0_20 = arith.constant 0 : index
    %49 = vector.load %arg2[%c0_19, %c0_20] : memref<128x512xbf16, #tpu.memory_space<vmem>>, vector<128x512xbf16>
    %cst_21 = arith.constant dense<0.000000e+00> : vector<8x512xf32>
    %50 = tpu.matmul %48, %49, %cst_21 {dimension_numbers = #tpu.dot_dimension_numbers<[1], [0], [0], [1], [0, 0, 1, 1], [], []>} : vector<8x128xbf16>, vector<128x512xbf16>, vector<8x512xf32> -> vector<8x512xf32>
    %51 = arith.addf %47, %50 : vector<8x512xf32>
    %52 = vector.extract_strided_slice %51 {offsets = [0, 0], sizes = [8, 128], strides = [1, 1]} : vector<8x512xf32> to vector<8x128xf32>
    %53 = arith.negf %52 : vector<8x128xf32>
    %54 = math.exp %53 : vector<8x128xf32>
    %cst_22 = arith.constant 1.000000e+00 : f32
    %55 = vector.broadcast %cst_22 : f32 to vector<8x128xf32>
    %56 = arith.addf %55, %54 : vector<8x128xf32>
    %57 = arith.divf %55, %56 : vector<8x128xf32>
    %58 = vector.extract_strided_slice %51 {offsets = [0, 128], sizes = [8, 128], strides = [1, 1]} : vector<8x512xf32> to vector<8x128xf32>
    %59 = arith.negf %58 : vector<8x128xf32>
    %60 = math.exp %59 : vector<8x128xf32>
    %cst_23 = arith.constant 1.000000e+00 : f32
    %61 = vector.broadcast %cst_23 : f32 to vector<8x128xf32>
    %62 = arith.addf %61, %60 : vector<8x128xf32>
    %63 = arith.divf %61, %62 : vector<8x128xf32>
    %64 = vector.extract_strided_slice %51 {offsets = [0, 256], sizes = [8, 128], strides = [1, 1]} : vector<8x512xf32> to vector<8x128xf32>
    %65 = math.tanh %64 : vector<8x128xf32>
    %66 = vector.extract_strided_slice %51 {offsets = [0, 384], sizes = [8, 128], strides = [1, 1]} : vector<8x512xf32> to vector<8x128xf32>
    %67 = arith.negf %66 : vector<8x128xf32>
    %68 = math.exp %67 : vector<8x128xf32>
    %cst_24 = arith.constant 1.000000e+00 : f32
    %69 = vector.broadcast %cst_24 : f32 to vector<8x128xf32>
    %70 = arith.addf %69, %68 : vector<8x128xf32>
    %71 = arith.divf %69, %70 : vector<8x128xf32>
    %72 = arith.mulf %63, %39 : vector<8x128xf32>
    %73 = arith.mulf %57, %65 : vector<8x128xf32>
    %74 = arith.addf %72, %73 : vector<8x128xf32>
    %75 = math.tanh %74 : vector<8x128xf32>
    %76 = arith.mulf %71, %75 : vector<8x128xf32>
    %77 = arith.index_cast %45 : i32 to index
    %c0_25 = arith.constant 0 : index
    %78 = vector.load %arg4[%77, %c0_25] : memref<64x128xf32, #tpu.memory_space<vmem>>, vector<8x128xf32>
    tpu.vector_store %arg4[%77, %c0_25], %76 {strides = array<i32>} : memref<64x128xf32, #tpu.memory_space<vmem>>, vector<8x128xf32>,
    %c2_i32 = arith.constant 2 : i32
    %c8_i32_26 = arith.constant 8 : i32
    %79 = arith.muli %c2_i32, %c8_i32_26 : i32
    %80 = tpu.assume_multiple %79, 8 : i32
    %81 = arith.index_cast %80 : i32 to index
    %c0_27 = arith.constant 0 : index
    %82 = vector.load %arg5[%81, %c0_27] : memref<64x512xf32, #tpu.memory_space<vmem>>, vector<8x512xf32>
    %83 = arith.truncf %76 : vector<8x128xf32> to vector<8x128xbf16>
    %c0_28 = arith.constant 0 : index
    %c0_29 = arith.constant 0 : index
    %84 = vector.load %arg2[%c0_28, %c0_29] : memref<128x512xbf16, #tpu.memory_space<vmem>>, vector<128x512xbf16>
    %cst_30 = arith.constant dense<0.000000e+00> : vector<8x512xf32>
    %85 = tpu.matmul %83, %84, %cst_30 {dimension_numbers = #tpu.dot_dimension_numbers<[1], [0], [0], [1], [0, 0, 1, 1], [], []>} : vector<8x128xbf16>, vector<128x512xbf16>, vector<8x512xf32> -> vector<8x512xf32>
    %86 = arith.addf %82, %85 : vector<8x512xf32>
    %87 = vector.extract_strided_slice %86 {offsets = [0, 0], sizes = [8, 128], strides = [1, 1]} : vector<8x512xf32> to vector<8x128xf32>
    %88 = arith.negf %87 : vector<8x128xf32>
    %89 = math.exp %88 : vector<8x128xf32>
    %cst_31 = arith.constant 1.000000e+00 : f32
    %90 = vector.broadcast %cst_31 : f32 to vector<8x128xf32>
    %91 = arith.addf %90, %89 : vector<8x128xf32>
    %92 = arith.divf %90, %91 : vector<8x128xf32>
    %93 = vector.extract_strided_slice %86 {offsets = [0, 128], sizes = [8, 128], strides = [1, 1]} : vector<8x512xf32> to vector<8x128xf32>
    %94 = arith.negf %93 : vector<8x128xf32>
    %95 = math.exp %94 : vector<8x128xf32>
    %cst_32 = arith.constant 1.000000e+00 : f32
    %96 = vector.broadcast %cst_32 : f32 to vector<8x128xf32>
    %97 = arith.addf %96, %95 : vector<8x128xf32>
    %98 = arith.divf %96, %97 : vector<8x128xf32>
    %99 = vector.extract_strided_slice %86 {offsets = [0, 256], sizes = [8, 128], strides = [1, 1]} : vector<8x512xf32> to vector<8x128xf32>
    %100 = math.tanh %99 : vector<8x128xf32>
    %101 = vector.extract_strided_slice %86 {offsets = [0, 384], sizes = [8, 128], strides = [1, 1]} : vector<8x512xf32> to vector<8x128xf32>
    %102 = arith.negf %101 : vector<8x128xf32>
    %103 = math.exp %102 : vector<8x128xf32>
    %cst_33 = arith.constant 1.000000e+00 : f32
    %104 = vector.broadcast %cst_33 : f32 to vector<8x128xf32>
    %105 = arith.addf %104, %103 : vector<8x128xf32>
    %106 = arith.divf %104, %105 : vector<8x128xf32>
    %107 = arith.mulf %98, %74 : vector<8x128xf32>
    %108 = arith.mulf %92, %100 : vector<8x128xf32>
    %109 = arith.addf %107, %108 : vector<8x128xf32>
    %110 = math.tanh %109 : vector<8x128xf32>
    %111 = arith.mulf %106, %110 : vector<8x128xf32>
    %112 = arith.index_cast %80 : i32 to index
    %c0_34 = arith.constant 0 : index
    %113 = vector.load %arg4[%112, %c0_34] : memref<64x128xf32, #tpu.memory_space<vmem>>, vector<8x128xf32>
    tpu.vector_store %arg4[%112, %c0_34], %111 {strides = array<i32>} : memref<64x128xf32, #tpu.memory_space<vmem>>, vector<8x128xf32>,
    %c3_i32 = arith.constant 3 : i32
    %c8_i32_35 = arith.constant 8 : i32
    %114 = arith.muli %c3_i32, %c8_i32_35 : i32
    %115 = tpu.assume_multiple %114, 8 : i32
    %116 = arith.index_cast %115 : i32 to index
    %c0_36 = arith.constant 0 : index
    %117 = vector.load %arg5[%116, %c0_36] : memref<64x512xf32, #tpu.memory_space<vmem>>, vector<8x512xf32>
    %118 = arith.truncf %111 : vector<8x128xf32> to vector<8x128xbf16>
    %c0_37 = arith.constant 0 : index
    %c0_38 = arith.constant 0 : index
    %119 = vector.load %arg2[%c0_37, %c0_38] : memref<128x512xbf16, #tpu.memory_space<vmem>>, vector<128x512xbf16>
    %cst_39 = arith.constant dense<0.000000e+00> : vector<8x512xf32>
    %120 = tpu.matmul %118, %119, %cst_39 {dimension_numbers = #tpu.dot_dimension_numbers<[1], [0], [0], [1], [0, 0, 1, 1], [], []>} : vector<8x128xbf16>, vector<128x512xbf16>, vector<8x512xf32> -> vector<8x512xf32>
    %121 = arith.addf %117, %120 : vector<8x512xf32>
    %122 = vector.extract_strided_slice %121 {offsets = [0, 0], sizes = [8, 128], strides = [1, 1]} : vector<8x512xf32> to vector<8x128xf32>
    %123 = arith.negf %122 : vector<8x128xf32>
    %124 = math.exp %123 : vector<8x128xf32>
    %cst_40 = arith.constant 1.000000e+00 : f32
    %125 = vector.broadcast %cst_40 : f32 to vector<8x128xf32>
    %126 = arith.addf %125, %124 : vector<8x128xf32>
    %127 = arith.divf %125, %126 : vector<8x128xf32>
    %128 = vector.extract_strided_slice %121 {offsets = [0, 128], sizes = [8, 128], strides = [1, 1]} : vector<8x512xf32> to vector<8x128xf32>
    %129 = arith.negf %128 : vector<8x128xf32>
    %130 = math.exp %129 : vector<8x128xf32>
    %cst_41 = arith.constant 1.000000e+00 : f32
    %131 = vector.broadcast %cst_41 : f32 to vector<8x128xf32>
    %132 = arith.addf %131, %130 : vector<8x128xf32>
    %133 = arith.divf %131, %132 : vector<8x128xf32>
    %134 = vector.extract_strided_slice %121 {offsets = [0, 256], sizes = [8, 128], strides = [1, 1]} : vector<8x512xf32> to vector<8x128xf32>
    %135 = math.tanh %134 : vector<8x128xf32>
    %136 = vector.extract_strided_slice %121 {offsets = [0, 384], sizes = [8, 128], strides = [1, 1]} : vector<8x512xf32> to vector<8x128xf32>
    %137 = arith.negf %136 : vector<8x128xf32>
    %138 = math.exp %137 : vector<8x128xf32>
    %cst_42 = arith.constant 1.000000e+00 : f32
    %139 = vector.broadcast %cst_42 : f32 to vector<8x128xf32>
    %140 = arith.addf %139, %138 : vector<8x128xf32>
    %141 = arith.divf %139, %140 : vector<8x128xf32>
    %142 = arith.mulf %133, %109 : vector<8x128xf32>
    %143 = arith.mulf %127, %135 : vector<8x128xf32>
    %144 = arith.addf %142, %143 : vector<8x128xf32>
    %145 = math.tanh %144 : vector<8x128xf32>
    %146 = arith.mulf %141, %145 : vector<8x128xf32>
    %147 = arith.index_cast %115 : i32 to index
    %c0_43 = arith.constant 0 : index
    %148 = vector.load %arg4[%147, %c0_43] : memref<64x128xf32, #tpu.memory_space<vmem>>, vector<8x128xf32>
    tpu.vector_store %arg4[%147, %c0_43], %146 {strides = array<i32>} : memref<64x128xf32, #tpu.memory_space<vmem>>, vector<8x128xf32>,
    %c4_i32 = arith.constant 4 : i32
    %c8_i32_44 = arith.constant 8 : i32
    %149 = arith.muli %c4_i32, %c8_i32_44 : i32
    %150 = tpu.assume_multiple %149, 8 : i32
    %151 = arith.index_cast %150 : i32 to index
    %c0_45 = arith.constant 0 : index
    %152 = vector.load %arg5[%151, %c0_45] : memref<64x512xf32, #tpu.memory_space<vmem>>, vector<8x512xf32>
    %153 = arith.truncf %146 : vector<8x128xf32> to vector<8x128xbf16>
    %c0_46 = arith.constant 0 : index
    %c0_47 = arith.constant 0 : index
    %154 = vector.load %arg2[%c0_46, %c0_47] : memref<128x512xbf16, #tpu.memory_space<vmem>>, vector<128x512xbf16>
    %cst_48 = arith.constant dense<0.000000e+00> : vector<8x512xf32>
    %155 = tpu.matmul %153, %154, %cst_48 {dimension_numbers = #tpu.dot_dimension_numbers<[1], [0], [0], [1], [0, 0, 1, 1], [], []>} : vector<8x128xbf16>, vector<128x512xbf16>, vector<8x512xf32> -> vector<8x512xf32>
    %156 = arith.addf %152, %155 : vector<8x512xf32>
    %157 = vector.extract_strided_slice %156 {offsets = [0, 0], sizes = [8, 128], strides = [1, 1]} : vector<8x512xf32> to vector<8x128xf32>
    %158 = arith.negf %157 : vector<8x128xf32>
    %159 = math.exp %158 : vector<8x128xf32>
    %cst_49 = arith.constant 1.000000e+00 : f32
    %160 = vector.broadcast %cst_49 : f32 to vector<8x128xf32>
    %161 = arith.addf %160, %159 : vector<8x128xf32>
    %162 = arith.divf %160, %161 : vector<8x128xf32>
    %163 = vector.extract_strided_slice %156 {offsets = [0, 128], sizes = [8, 128], strides = [1, 1]} : vector<8x512xf32> to vector<8x128xf32>
    %164 = arith.negf %163 : vector<8x128xf32>
    %165 = math.exp %164 : vector<8x128xf32>
    %cst_50 = arith.constant 1.000000e+00 : f32
    %166 = vector.broadcast %cst_50 : f32 to vector<8x128xf32>
    %167 = arith.addf %166, %165 : vector<8x128xf32>
    %168 = arith.divf %166, %167 : vector<8x128xf32>
    %169 = vector.extract_strided_slice %156 {offsets = [0, 256], sizes = [8, 128], strides = [1, 1]} : vector<8x512xf32> to vector<8x128xf32>
    %170 = math.tanh %169 : vector<8x128xf32>
    %171 = vector.extract_strided_slice %156 {offsets = [0, 384], sizes = [8, 128], strides = [1, 1]} : vector<8x512xf32> to vector<8x128xf32>
    %172 = arith.negf %171 : vector<8x128xf32>
    %173 = math.exp %172 : vector<8x128xf32>
    %cst_51 = arith.constant 1.000000e+00 : f32
    %174 = vector.broadcast %cst_51 : f32 to vector<8x128xf32>
    %175 = arith.addf %174, %173 : vector<8x128xf32>
    %176 = arith.divf %174, %175 : vector<8x128xf32>
    %177 = arith.mulf %168, %144 : vector<8x128xf32>
    %178 = arith.mulf %162, %170 : vector<8x128xf32>
    %179 = arith.addf %177, %178 : vector<8x128xf32>
    %180 = math.tanh %179 : vector<8x128xf32>
    %181 = arith.mulf %176, %180 : vector<8x128xf32>
    %182 = arith.index_cast %150 : i32 to index
    %c0_52 = arith.constant 0 : index
    %183 = vector.load %arg4[%182, %c0_52] : memref<64x128xf32, #tpu.memory_space<vmem>>, vector<8x128xf32>
    tpu.vector_store %arg4[%182, %c0_52], %181 {strides = array<i32>} : memref<64x128xf32, #tpu.memory_space<vmem>>, vector<8x128xf32>,
    %c5_i32 = arith.constant 5 : i32
    %c8_i32_53 = arith.constant 8 : i32
    %184 = arith.muli %c5_i32, %c8_i32_53 : i32
    %185 = tpu.assume_multiple %184, 8 : i32
    %186 = arith.index_cast %185 : i32 to index
    %c0_54 = arith.constant 0 : index
    %187 = vector.load %arg5[%186, %c0_54] : memref<64x512xf32, #tpu.memory_space<vmem>>, vector<8x512xf32>
    %188 = arith.truncf %181 : vector<8x128xf32> to vector<8x128xbf16>
    %c0_55 = arith.constant 0 : index
    %c0_56 = arith.constant 0 : index
    %189 = vector.load %arg2[%c0_55, %c0_56] : memref<128x512xbf16, #tpu.memory_space<vmem>>, vector<128x512xbf16>
    %cst_57 = arith.constant dense<0.000000e+00> : vector<8x512xf32>
    %190 = tpu.matmul %188, %189, %cst_57 {dimension_numbers = #tpu.dot_dimension_numbers<[1], [0], [0], [1], [0, 0, 1, 1], [], []>} : vector<8x128xbf16>, vector<128x512xbf16>, vector<8x512xf32> -> vector<8x512xf32>
    %191 = arith.addf %187, %190 : vector<8x512xf32>
    %192 = vector.extract_strided_slice %191 {offsets = [0, 0], sizes = [8, 128], strides = [1, 1]} : vector<8x512xf32> to vector<8x128xf32>
    %193 = arith.negf %192 : vector<8x128xf32>
    %194 = math.exp %193 : vector<8x128xf32>
    %cst_58 = arith.constant 1.000000e+00 : f32
    %195 = vector.broadcast %cst_58 : f32 to vector<8x128xf32>
    %196 = arith.addf %195, %194 : vector<8x128xf32>
    %197 = arith.divf %195, %196 : vector<8x128xf32>
    %198 = vector.extract_strided_slice %191 {offsets = [0, 128], sizes = [8, 128], strides = [1, 1]} : vector<8x512xf32> to vector<8x128xf32>
    %199 = arith.negf %198 : vector<8x128xf32>
    %200 = math.exp %199 : vector<8x128xf32>
    %cst_59 = arith.constant 1.000000e+00 : f32
    %201 = vector.broadcast %cst_59 : f32 to vector<8x128xf32>
    %202 = arith.addf %201, %200 : vector<8x128xf32>
    %203 = arith.divf %201, %202 : vector<8x128xf32>
    %204 = vector.extract_strided_slice %191 {offsets = [0, 256], sizes = [8, 128], strides = [1, 1]} : vector<8x512xf32> to vector<8x128xf32>
    %205 = math.tanh %204 : vector<8x128xf32>
    %206 = vector.extract_strided_slice %191 {offsets = [0, 384], sizes = [8, 128], strides = [1, 1]} : vector<8x512xf32> to vector<8x128xf32>
    %207 = arith.negf %206 : vector<8x128xf32>
    %208 = math.exp %207 : vector<8x128xf32>
    %cst_60 = arith.constant 1.000000e+00 : f32
    %209 = vector.broadcast %cst_60 : f32 to vector<8x128xf32>
    %210 = arith.addf %209, %208 : vector<8x128xf32>
    %211 = arith.divf %209, %210 : vector<8x128xf32>
    %212 = arith.mulf %203, %179 : vector<8x128xf32>
    %213 = arith.mulf %197, %205 : vector<8x128xf32>
    %214 = arith.addf %212, %213 : vector<8x128xf32>
    %215 = math.tanh %214 : vector<8x128xf32>
    %216 = arith.mulf %211, %215 : vector<8x128xf32>
    %217 = arith.index_cast %185 : i32 to index
    %c0_61 = arith.constant 0 : index
    %218 = vector.load %arg4[%217, %c0_61] : memref<64x128xf32, #tpu.memory_space<vmem>>, vector<8x128xf32>
    tpu.vector_store %arg4[%217, %c0_61], %216 {strides = array<i32>} : memref<64x128xf32, #tpu.memory_space<vmem>>, vector<8x128xf32>,
    %c6_i32 = arith.constant 6 : i32
    %c8_i32_62 = arith.constant 8 : i32
    %219 = arith.muli %c6_i32, %c8_i32_62 : i32
    %220 = tpu.assume_multiple %219, 8 : i32
    %221 = arith.index_cast %220 : i32 to index
    %c0_63 = arith.constant 0 : index
    %222 = vector.load %arg5[%221, %c0_63] : memref<64x512xf32, #tpu.memory_space<vmem>>, vector<8x512xf32>
    %223 = arith.truncf %216 : vector<8x128xf32> to vector<8x128xbf16>
    %c0_64 = arith.constant 0 : index
    %c0_65 = arith.constant 0 : index
    %224 = vector.load %arg2[%c0_64, %c0_65] : memref<128x512xbf16, #tpu.memory_space<vmem>>, vector<128x512xbf16>
    %cst_66 = arith.constant dense<0.000000e+00> : vector<8x512xf32>
    %225 = tpu.matmul %223, %224, %cst_66 {dimension_numbers = #tpu.dot_dimension_numbers<[1], [0], [0], [1], [0, 0, 1, 1], [], []>} : vector<8x128xbf16>, vector<128x512xbf16>, vector<8x512xf32> -> vector<8x512xf32>
    %226 = arith.addf %222, %225 : vector<8x512xf32>
    %227 = vector.extract_strided_slice %226 {offsets = [0, 0], sizes = [8, 128], strides = [1, 1]} : vector<8x512xf32> to vector<8x128xf32>
    %228 = arith.negf %227 : vector<8x128xf32>
    %229 = math.exp %228 : vector<8x128xf32>
    %cst_67 = arith.constant 1.000000e+00 : f32
    %230 = vector.broadcast %cst_67 : f32 to vector<8x128xf32>
    %231 = arith.addf %230, %229 : vector<8x128xf32>
    %232 = arith.divf %230, %231 : vector<8x128xf32>
    %233 = vector.extract_strided_slice %226 {offsets = [0, 128], sizes = [8, 128], strides = [1, 1]} : vector<8x512xf32> to vector<8x128xf32>
    %234 = arith.negf %233 : vector<8x128xf32>
    %235 = math.exp %234 : vector<8x128xf32>
    %cst_68 = arith.constant 1.000000e+00 : f32
    %236 = vector.broadcast %cst_68 : f32 to vector<8x128xf32>
    %237 = arith.addf %236, %235 : vector<8x128xf32>
    %238 = arith.divf %236, %237 : vector<8x128xf32>
    %239 = vector.extract_strided_slice %226 {offsets = [0, 256], sizes = [8, 128], strides = [1, 1]} : vector<8x512xf32> to vector<8x128xf32>
    %240 = math.tanh %239 : vector<8x128xf32>
    %241 = vector.extract_strided_slice %226 {offsets = [0, 384], sizes = [8, 128], strides = [1, 1]} : vector<8x512xf32> to vector<8x128xf32>
    %242 = arith.negf %241 : vector<8x128xf32>
    %243 = math.exp %242 : vector<8x128xf32>
    %cst_69 = arith.constant 1.000000e+00 : f32
    %244 = vector.broadcast %cst_69 : f32 to vector<8x128xf32>
    %245 = arith.addf %244, %243 : vector<8x128xf32>
    %246 = arith.divf %244, %245 : vector<8x128xf32>
    %247 = arith.mulf %238, %214 : vector<8x128xf32>
    %248 = arith.mulf %232, %240 : vector<8x128xf32>
    %249 = arith.addf %247, %248 : vector<8x128xf32>
    %250 = math.tanh %249 : vector<8x128xf32>
    %251 = arith.mulf %246, %250 : vector<8x128xf32>
    %252 = arith.index_cast %220 : i32 to index
    %c0_70 = arith.constant 0 : index
    %253 = vector.load %arg4[%252, %c0_70] : memref<64x128xf32, #tpu.memory_space<vmem>>, vector<8x128xf32>
    tpu.vector_store %arg4[%252, %c0_70], %251 {strides = array<i32>} : memref<64x128xf32, #tpu.memory_space<vmem>>, vector<8x128xf32>,
    %c7_i32 = arith.constant 7 : i32
    %c8_i32_71 = arith.constant 8 : i32
    %254 = arith.muli %c7_i32, %c8_i32_71 : i32
    %255 = tpu.assume_multiple %254, 8 : i32
    %256 = arith.index_cast %255 : i32 to index
    %c0_72 = arith.constant 0 : index
    %257 = vector.load %arg5[%256, %c0_72] : memref<64x512xf32, #tpu.memory_space<vmem>>, vector<8x512xf32>
    %258 = arith.truncf %251 : vector<8x128xf32> to vector<8x128xbf16>
    %c0_73 = arith.constant 0 : index
    %c0_74 = arith.constant 0 : index
    %259 = vector.load %arg2[%c0_73, %c0_74] : memref<128x512xbf16, #tpu.memory_space<vmem>>, vector<128x512xbf16>
    %cst_75 = arith.constant dense<0.000000e+00> : vector<8x512xf32>
    %260 = tpu.matmul %258, %259, %cst_75 {dimension_numbers = #tpu.dot_dimension_numbers<[1], [0], [0], [1], [0, 0, 1, 1], [], []>} : vector<8x128xbf16>, vector<128x512xbf16>, vector<8x512xf32> -> vector<8x512xf32>
    %261 = arith.addf %257, %260 : vector<8x512xf32>
    %262 = vector.extract_strided_slice %261 {offsets = [0, 0], sizes = [8, 128], strides = [1, 1]} : vector<8x512xf32> to vector<8x128xf32>
    %263 = arith.negf %262 : vector<8x128xf32>
    %264 = math.exp %263 : vector<8x128xf32>
    %cst_76 = arith.constant 1.000000e+00 : f32
    %265 = vector.broadcast %cst_76 : f32 to vector<8x128xf32>
    %266 = arith.addf %265, %264 : vector<8x128xf32>
    %267 = arith.divf %265, %266 : vector<8x128xf32>
    %268 = vector.extract_strided_slice %261 {offsets = [0, 128], sizes = [8, 128], strides = [1, 1]} : vector<8x512xf32> to vector<8x128xf32>
    %269 = arith.negf %268 : vector<8x128xf32>
    %270 = math.exp %269 : vector<8x128xf32>
    %cst_77 = arith.constant 1.000000e+00 : f32
    %271 = vector.broadcast %cst_77 : f32 to vector<8x128xf32>
    %272 = arith.addf %271, %270 : vector<8x128xf32>
    %273 = arith.divf %271, %272 : vector<8x128xf32>
    %274 = vector.extract_strided_slice %261 {offsets = [0, 256], sizes = [8, 128], strides = [1, 1]} : vector<8x512xf32> to vector<8x128xf32>
    %275 = math.tanh %274 : vector<8x128xf32>
    %276 = vector.extract_strided_slice %261 {offsets = [0, 384], sizes = [8, 128], strides = [1, 1]} : vector<8x512xf32> to vector<8x128xf32>
    %277 = arith.negf %276 : vector<8x128xf32>
    %278 = math.exp %277 : vector<8x128xf32>
    %cst_78 = arith.constant 1.000000e+00 : f32
    %279 = vector.broadcast %cst_78 : f32 to vector<8x128xf32>
    %280 = arith.addf %279, %278 : vector<8x128xf32>
    %281 = arith.divf %279, %280 : vector<8x128xf32>
    %282 = arith.mulf %273, %249 : vector<8x128xf32>
    %283 = arith.mulf %267, %275 : vector<8x128xf32>
    %284 = arith.addf %282, %283 : vector<8x128xf32>
    %285 = math.tanh %284 : vector<8x128xf32>
    %286 = arith.mulf %281, %285 : vector<8x128xf32>
    %287 = arith.index_cast %255 : i32 to index
    %c0_79 = arith.constant 0 : index
    %288 = vector.load %arg4[%287, %c0_79] : memref<64x128xf32, #tpu.memory_space<vmem>>, vector<8x128xf32>
    tpu.vector_store %arg4[%287, %c0_79], %286 {strides = array<i32>} : memref<64x128xf32, #tpu.memory_space<vmem>>, vector<8x128xf32>,
    %c8_i32_80 = arith.constant 8 : i32
    return
  }
}

</mosaic_0001>

<bundles_post_ra>
// kernel: tpu_custom_call.1
= control target key start
LH: loop header
LB: loop body
LE: loop exit
PB: predicated region body
PF: predicated region fallthrough
CT: control target
= control target key end

     0   :  { %9 = vsyncpa [#allocation4], 0  ;;  %s4337_s0 = inlined_call_operand.hbm [shape: bf16[64,128], index: 0, kind: input, shape index: {}]   ;;  %s4338_s1 = inlined_call_operand.hbm [shape: bf16[128,512], index: 1, kind: input, shape index: {}]   ;;  %s4339_s2 = inlined_call_operand.hbm [shape: bf16[128,512], index: 2, kind: input, shape index: {}]   ;;  %s4340_s3 = inlined_call_operand.vmem [shape: f32[1,512], index: 3, kind: input, shape index: {}]   ;;  %s4341_s4 = inlined_call_operand.hbm [shape: f32[64,128], index: 4, kind: output, shape index: {}]  }
   0x1   :  { %10 = vsyncpa [#allocation7], 0 }
   0x2   :  { %11 = vsyncpa [#allocation5], 0  ;;  %s3700_s15 = smov [#allocation6]   ;;  %s3606_s19 = scalar_lea.hbm %s4338_s1, 4096 }
   0x3   :  { %s29_s16 = sshll.u32 %s3700_s15, 4  ;;  %p3607_p0 = scmp.ne.s32.totalorder %s4338_s1, %s3606_s19  ;;  %s30_s16 = int_to_ptr.vmem [resolvable:$true] %s29_s16 }
   0x4   :  { %p3610_p1 = scmp.lt.u32.totalorder %s3606_s19, %s4338_s1 }
   0x6   :  { %p3612_p2 = pnand %p3610_p1, %p3607_p0 }
   0x8   :  { %3615 = shalt.err (!%p3612_p2)
}
   0x9   :  { %s3616_s24 = scalar_lea.vmem %s30_s16, 4096  ;;  %p3621_p4 = scmp.lt.s32.totalorder %s30_s16, %s30_s16 }
   0xa   :  { %p3617_p3 = scmp.ne.s32.totalorder %s30_s16, %s3616_s24  ;;  %p3622_p5 = scmp.lt.s32.totalorder %s3616_s24, %s3616_s24 }
   0xc   :  { %p3623_p6 = por %p3622_p5, %p3621_p4 }
   0xe   :  { %p3624_p7 = pnand %p3623_p6, %p3617_p3 }
  0x10   :  { %3627 = shalt.err (!%p3624_p7)
}
  0x11   :  { %s3701_s25 = smov 256   ;;  %s3702_s26 = smov 16  }
  0x12   :  { %35 = dma.hbm_to_vmem [thread:$0]  %s4338_s1, 4096, %s30_s16, [#allocation7], %s3701_s25, %s3701_s25, %s3702_s26  }
  0x13   :  { %s3703_s29 = smov [#allocation3]   ;;  %s3628_s7 = scalar_lea.hbm %s4337_s0, 512 }
  0x14   :  { %s17_s30 = sshll.u32 %s3703_s29, 4  ;;  %p3629_p8 = scmp.ne.s32.totalorder %s4337_s0, %s3628_s7  ;;  %s18_s30 = int_to_ptr.vmem [resolvable:$true] %s17_s30 }
  0x15   :  { %p3632_p9 = scmp.lt.u32.totalorder %s3628_s7, %s4337_s0 }
  0x17   :  { %p3634_p10 = pnand %p3632_p9, %p3629_p8 }
  0x19   :  { %3637 = shalt.err (!%p3634_p10)
}
  0x1a   :  { %s3638_s12 = scalar_lea.vmem %s18_s30, 512  ;;  %p3643_p12 = scmp.lt.s32.totalorder %s18_s30, %s18_s30 }
  0x1b   :  { %p3639_p11 = scmp.ne.s32.totalorder %s18_s30, %s3638_s12  ;;  %p3644_p13 = scmp.lt.s32.totalorder %s3638_s12, %s3638_s12 }
  0x1d   :  { %p3645_p0 = por %p3644_p13, %p3643_p12 }
  0x1f   :  { %p3646_p1 = pnand %p3645_p0, %p3639_p11 }
  0x21   :  { %3649 = shalt.err (!%p3646_p1)
}
  0x22   :  { %s3704_s1 = smov 64   ;;  %s3705_s13 = smov 4  }
  0x23   :  { %23 = dma.hbm_to_vmem [thread:$0]  %s4337_s0, 512, %s18_s30, [#allocation4], %s3704_s1, %s3704_s1, %s3705_s13  }
  0x24   :  { %s3706_s16 = smov [#allocation8]   ;;  %s3650_s20 = scalar_lea.hbm %s4339_s2, 4096 }
  0x25   :  { %s41_s17 = sshll.u32 %s3706_s16, 4  ;;  %p3651_p2 = scmp.ne.s32.totalorder %s4339_s2, %s3650_s20  ;;  %s42_s17 = int_to_ptr.vmem [resolvable:$true] %s41_s17 }
  0x26   :  { %p3654_p3 = scmp.lt.u32.totalorder %s3650_s20, %s4339_s2 }
  0x28   :  { %p3656_p4 = pnand %p3654_p3, %p3651_p2 }
  0x2a   :  { %3659 = shalt.err (!%p3656_p4)
}
  0x2b   :  { %s3660_s27 = scalar_lea.vmem %s42_s17, 4096  ;;  %p3665_p6 = scmp.lt.s32.totalorder %s42_s17, %s42_s17 }
  0x2c   :  { %p3661_p5 = scmp.ne.s32.totalorder %s42_s17, %s3660_s27  ;;  %p3666_p7 = scmp.lt.s32.totalorder %s3660_s27, %s3660_s27 }
  0x2e   :  { %p3667_p8 = por %p3666_p7, %p3665_p6 }
  0x30   :  { %p3668_p9 = pnand %p3667_p8, %p3661_p5 }
  0x32   :  { %3671 = shalt.err (!%p3668_p9)
}
  0x33   :  { %47 = dma.hbm_to_vmem [thread:$0]  %s4339_s2, 4096, %s42_s17, [#allocation7], %s3701_s25, %s3701_s25, %s3702_s26  }
  0x34   :  { %3694 = dma.done.wait [#allocation4], 512  }
  0x35   :  { %3695 = vsyncadd [#allocation4], 4294966784 }
  0x36   :  { %3696 = dma.done.wait [#allocation7], 8192  }
  0x37   :  { %3697 = vsyncadd [#allocation7], 4294959104  ;;  %v4342_v0 = vmov 0   ;;  %v3330_v1 = vld [vmem:[#allocation6 + $0x4] ss:$16 sps:$4 sm:$0xff]   ;;  %v3391_v44 = vld [vmem:[#allocation3 + $0x8] sm:$0xff]  }
  0x38   :  { %338 = vmatprep.mubr.bf16.mxu0 %v4342_v0  ;;  %411 = vmatprep.mubr.bf16.mxu1 %v4342_v0  ;;  %v3332_v2 = vld [vmem:[#allocation6 + $0xc] ss:$16 sps:$4 sm:$0xff]   ;;  %v3334_v3 = vld [vmem:[#allocation6] ss:$16 sps:$4 sm:$0xff]   ;;  %v3335_v4 = vld [vmem:[#allocation6 + $0x8] ss:$16 sps:$4 sm:$0xff]  }
  0x39   :  { %306 = vmatprep.subr.bf16.mxu0 %v3330_v1  ;;  %379 = vmatprep.subr.bf16.mxu1 %v3332_v2  ;;  %v3336_v5 = vld [vmem:[#allocation6 + $0x24] ss:$16 sps:$4 sm:$0xff]   ;;  %v3338_v6 = vld [vmem:[#allocation6 + $0x2c] ss:$16 sps:$4 sm:$0xff]   ;;  %v3340_v7 = vld [vmem:[#allocation6 + $0x20] ss:$16 sps:$4 sm:$0xff]  }
  0x3a   :  { %307 = vmatpush1.bf16.msra.mxu0 %v3334_v3  ;;  %380 = vmatpush1.bf16.msra.mxu1 %v3335_v4  ;;  %v3341_v8 = vld [vmem:[#allocation6 + $0x28] ss:$16 sps:$4 sm:$0xff]   ;;  %v3342_v9 = vld [vmem:[#allocation6 + $0x44] ss:$16 sps:$4 sm:$0xff]   ;;  %v3344_v10 = vld [vmem:[#allocation6 + $0x4c] ss:$16 sps:$4 sm:$0xff]  }
  0x3b   :  { %308 = vmatprep.subr.bf16.mxu0 %v3336_v5  ;;  %381 = vmatprep.subr.bf16.mxu1 %v3338_v6  ;;  %v3346_v11 = vld [vmem:[#allocation6 + $0x40] ss:$16 sps:$4 sm:$0xff]   ;;  %v3347_v12 = vld [vmem:[#allocation6 + $0x48] ss:$16 sps:$4 sm:$0xff]   ;;  %v3348_v13 = vld [vmem:[#allocation6 + $0x64] ss:$16 sps:$4 sm:$0xff]   ;;  %v102_v6 = vlaneseq }
  0x3c   :  { %v3350_v14 = vld [vmem:[#allocation6 + $0x6c] ss:$16 sps:$4 sm:$0xff]   ;;  %v3352_v15 = vld [vmem:[#allocation6 + $0x60] ss:$16 sps:$4 sm:$0xff]   ;;  %v3353_v16 = vld [vmem:[#allocation6 + $0x68] ss:$16 sps:$4 sm:$0xff]  }
  0x3d   :  { %v3354_v17 = vld [vmem:[#allocation6 + $0x84] ss:$16 sps:$4 sm:$0xff]   ;;  %v3356_v18 = vld [vmem:[#allocation6 + $0x8c] ss:$16 sps:$4 sm:$0xff]   ;;  %v3358_v19 = vld [vmem:[#allocation6 + $0x80] ss:$16 sps:$4 sm:$0xff]  }
  0x3e   :  { %309 = vmatpush1.bf16.msra.mxu0 %v3340_v7  ;;  %382 = vmatpush1.bf16.msra.mxu1 %v3341_v8  ;;  %v3359_v20 = vld [vmem:[#allocation6 + $0x88] ss:$16 sps:$4 sm:$0xff]   ;;  %v3360_v21 = vld [vmem:[#allocation6 + $0xa4] ss:$16 sps:$4 sm:$0xff]   ;;  %v3362_v22 = vld [vmem:[#allocation6 + $0xac] ss:$16 sps:$4 sm:$0xff]  }
  0x3f   :  { %310 = vmatprep.subr.bf16.mxu0 %v3342_v9  ;;  %383 = vmatprep.subr.bf16.mxu1 %v3344_v10  ;;  %v3364_v23 = vld [vmem:[#allocation6 + $0xa0] ss:$16 sps:$4 sm:$0xff]   ;;  %v3365_v24 = vld [vmem:[#allocation6 + $0xa8] ss:$16 sps:$4 sm:$0xff]   ;;  %v3366_v25 = vld [vmem:[#allocation6 + $0xc4] ss:$16 sps:$4 sm:$0xff]  }
  0x40   :  { %v3368_v26 = vld [vmem:[#allocation6 + $0xcc] ss:$16 sps:$4 sm:$0xff]   ;;  %v3370_v27 = vld [vmem:[#allocation6 + $0xc0] ss:$16 sps:$4 sm:$0xff]   ;;  %v3371_v28 = vld [vmem:[#allocation6 + $0xc8] ss:$16 sps:$4 sm:$0xff]  }
  0x41   :  { %v3372_v29 = vld [vmem:[#allocation6 + $0xe4] ss:$16 sps:$4 sm:$0xff]   ;;  %v3374_v30 = vld [vmem:[#allocation6 + $0xec] ss:$16 sps:$4 sm:$0xff]   ;;  %v3376_v31 = vld [vmem:[#allocation6 + $0xe0] ss:$16 sps:$4 sm:$0xff]  }
  0x42   :  { %311 = vmatpush1.bf16.msra.mxu0 %v3346_v11  ;;  %384 = vmatpush1.bf16.msra.mxu1 %v3347_v12  ;;  %v3377_v32 = vld [vmem:[#allocation6 + $0xe8] ss:$16 sps:$4 sm:$0xff]   ;;  %v3780_v33 = vld [vmem:[#allocation8 + $0x4] ss:$16 sps:$4 sm:$0xff]   ;;  %v3782_v34 = vld [vmem:[#allocation8 + $0xc] ss:$16 sps:$4 sm:$0xff]  }
  0x43   :  { %312 = vmatprep.subr.bf16.mxu0 %v3348_v13  ;;  %385 = vmatprep.subr.bf16.mxu1 %v3350_v14  ;;  %v3378_v35 = vld [vmem:[#allocation3] sm:$0xff]   ;;  %v3786_v37 = vld [vmem:[#allocation8 + $0x8] ss:$16 sps:$4 sm:$0xff]   ;;  %v3792_v39 = vld [vmem:[#allocation8 + $0x2c] ss:$16 sps:$4 sm:$0xff]   ;;  %v103_v7 = vshrl.u32 %v102_v6, 7 }
  0x44   :  { %v3784_v36 = vld [vmem:[#allocation8] ss:$16 sps:$4 sm:$0xff]   ;;  %v3790_v38 = vld [vmem:[#allocation8 + $0x24] ss:$16 sps:$4 sm:$0xff]   ;;  %v3798_v41 = vld [vmem:[#allocation8 + $0x28] ss:$16 sps:$4 sm:$0xff]  }
  0x45   :  { %v3794_v40 = vld [vmem:[#allocation8 + $0x20] ss:$16 sps:$4 sm:$0xff]   ;;  %v3802_v42 = vld [vmem:[#allocation8 + $0x44] ss:$16 sps:$4 sm:$0xff]   ;;  %v3804_v43 = vld [vmem:[#allocation8 + $0x4c] ss:$16 sps:$4 sm:$0xff]  }
  0x46   :  { %313 = vmatpush1.bf16.msra.mxu0 %v3352_v15  ;;  %386 = vmatpush1.bf16.msra.mxu1 %v3353_v16  ;;  %v3808_v45 = vld [vmem:[#allocation8 + $0x40] ss:$16 sps:$4 sm:$0xff]   ;;  %v3810_v46 = vld [vmem:[#allocation8 + $0x48] ss:$16 sps:$4 sm:$0xff]   ;;  %v3814_v47 = vld [vmem:[#allocation8 + $0x64] ss:$16 sps:$4 sm:$0xff]  }
  0x47   :  { %314 = vmatprep.subr.bf16.mxu0 %v3354_v17  ;;  %387 = vmatprep.subr.bf16.mxu1 %v3356_v18  ;;  %v3818_v48 = vld [vmem:[#allocation8 + $0x6c] ss:$16 sps:$4 sm:$0xff]   ;;  %v3820_v49 = vld [vmem:[#allocation8 + $0x60] ss:$16 sps:$4 sm:$0xff]   ;;  %v3822_v50 = vld [vmem:[#allocation8 + $0x68] ss:$16 sps:$4 sm:$0xff]  }
  0x48   :  { %v3826_v51 = vld [vmem:[#allocation8 + $0x84] ss:$16 sps:$4 sm:$0xff]   ;;  %v3830_v52 = vld [vmem:[#allocation8 + $0x8c] ss:$16 sps:$4 sm:$0xff]   ;;  %v3834_v54 = vld [vmem:[#allocation8 + $0x80] ss:$16 sps:$4 sm:$0xff]  }
  0x49   :  { %v3404_v53 = vld [vmem:[#allocation3 + $0x10] sm:$0xff]   ;;  %v3836_v55 = vld [vmem:[#allocation8 + $0x88] ss:$16 sps:$4 sm:$0xff]   ;;  %v3840_v57 = vld [vmem:[#allocation8 + $0xac] ss:$16 sps:$4 sm:$0xff]   ;;  %v112_v8 = vsub.s32 2, %v103_v7 }
  0x4a   :  { %315 = vmatpush1.bf16.msra.mxu0 %v3358_v19  ;;  %388 = vmatpush1.bf16.msra.mxu1 %v3359_v20  ;;  %v3838_v56 = vld [vmem:[#allocation8 + $0xa4] ss:$16 sps:$4 sm:$0xff]   ;;  %v3846_v58 = vld [vmem:[#allocation8 + $0xa0] ss:$16 sps:$4 sm:$0xff]   ;;  %v3848_v59 = vld [vmem:[#allocation8 + $0xa8] ss:$16 sps:$4 sm:$0xff]  }
  0x4b   :  { %316 = vmatprep.subr.bf16.mxu0 %v3360_v21  ;;  %389 = vmatprep.subr.bf16.mxu1 %v3362_v22  ;;  %v3850_v60 = vld [vmem:[#allocation8 + $0xc4] ss:$16 sps:$4 sm:$0xff]   ;;  %v3852_v61 = vld [vmem:[#allocation8 + $0xcc] ss:$16 sps:$4 sm:$0xff]   ;;  %v3860_v63 = vld [vmem:[#allocation8 + $0xc0] ss:$16 sps:$4 sm:$0xff]  }
  0x4c   :  { %v3417_v62 = vld [vmem:[#allocation3 + $0x18] sm:$0xff]   ;;  %v3864_v2 = vld [vmem:[#allocation8 + $0xe4] ss:$16 sps:$4 sm:$0xff]   ;;  %v3874_v4 = vld [vmem:[#allocation8 + $0xe0] ss:$16 sps:$4 sm:$0xff]   ;;  %v116_v9 = vsub.s32 3, %v103_v7 }
  0x4d   :  { %v3862_v1 = vld [vmem:[#allocation8 + $0xc8] ss:$16 sps:$4 sm:$0xff]   ;;  %v3870_v3 = vld [vmem:[#allocation8 + $0xec] ss:$16 sps:$4 sm:$0xff]   ;;  %v104_v10 = vsub.s32 0, %v103_v7  ;;  %v108_v12 = vsub.s32 1, %v103_v7 }
  0x4e   :  { %317 = vmatpush1.bf16.msra.mxu0 %v3364_v23  ;;  %390 = vmatpush1.bf16.msra.mxu1 %v3365_v24  ;;  %v3876_v5 = vld [vmem:[#allocation8 + $0xe8] ss:$16 sps:$4 sm:$0xff]   ;;  %v100_v11 = vld [vmem:[%s4340_s3] sm:$0xf]  ;;  %s3708_s3 = smov [#allocation9]  }
  0x4f   :  { %318 = vmatprep.subr.bf16.mxu0 %v3366_v25  ;;  %391 = vmatprep.subr.bf16.mxu1 %v3368_v26  ;;  %v3925_v13 = vrot.slane %v100_v11, %v112_v8  ;;  %v3931_v16 = vrot.slane %v100_v11, %v116_v9  ;;  %v105_v17 = vrot.slane %v100_v11, %v104_v10  ;;  %s2983_s26 = sshll.u32 %s3708_s3, 4  ;;  %s2984_s26 = int_to_ptr.vmem [resolvable:$true] %s2983_s26 }
  0x50   :  { %v109_v20 = vrot.slane %v100_v11, %v108_v12  ;;  %s3672_s29 = scalar_lea.vmem %s2984_s26, 1024  ;;  %p3677_p11 = scmp.lt.s32.totalorder %s2984_s26, %s2984_s26 }
  0x51   :  { %p3673_p10 = scmp.ne.s32.totalorder %s2984_s26, %s3672_s29  ;;  %p3678_p12 = scmp.lt.s32.totalorder %s3672_s29, %s3672_s29 }
  0x52   :  { %319 = vmatpush1.bf16.msra.mxu0 %v3370_v27  ;;  %392 = vmatpush1.bf16.msra.mxu1 %v3371_v28 }
  0x53   :  { %320 = vmatprep.subr.bf16.mxu0 %v3372_v29  ;;  %393 = vmatprep.subr.bf16.mxu1 %v3374_v30  ;;  %p3679_p13 = por %p3678_p12, %p3677_p11 }
  0x55   :  { %p3680_p0 = pnand %p3679_p13, %p3673_p10 }
  0x56   :  { %321 = vmatpush1.bf16.msra.mxu0 %v3376_v31  ;;  %394 = vmatpush1.bf16.msra.mxu1 %v3377_v32 }
  0x57   :  { %683 = vmatprep.subr.bf16.mxu0 %v3780_v33  ;;  %724 = vmatprep.subr.bf16.mxu1 %v3782_v34 }
  0x59   :  { %339 = vmatmul.mubr.bf16.vlgmr.msra.gmra.mrb[0].mxu0 %v3378_v35  ;;  %412 = vmatmul.mubr.bf16.vlgmr.msra.gmra.mrb[0].mxu1 %v3378_v35 }
  0x5a   :  { %684 = vmatpush1.bf16.msra.mxu0 %v3784_v36  ;;  %725 = vmatpush1.bf16.msra.mxu1 %v3786_v37 }
  0x5b   :  { %685 = vmatprep.subr.bf16.mxu0 %v3790_v38  ;;  %726 = vmatprep.subr.bf16.mxu1 %v3792_v39 }
  0x5c   :  { %348 = vmatprep.mubr.bf16.mxu0 %v4342_v0  ;;  %421 = vmatprep.mubr.bf16.mxu1 %v4342_v0 }
  0x5e   :  { %686 = vmatpush1.bf16.msra.mxu0 %v3794_v40  ;;  %727 = vmatpush1.bf16.msra.mxu1 %v3798_v41 }
  0x5f   :  { %687 = vmatprep.subr.bf16.mxu0 %v3802_v42  ;;  %728 = vmatprep.subr.bf16.mxu1 %v3804_v43 }
  0x61   :  { %349 = vmatmul.mubr.bf16.gmra.mrb[4].mxu0 %v3391_v44  ;;  %422 = vmatmul.mubr.bf16.gmra.mrb[4].mxu1 %v3391_v44 }
  0x62   :  { %688 = vmatpush1.bf16.msra.mxu0 %v3808_v45  ;;  %729 = vmatpush1.bf16.msra.mxu1 %v3810_v46 }
  0x63   :  { %689 = vmatprep.subr.bf16.mxu0 %v3814_v47  ;;  %730 = vmatprep.subr.bf16.mxu1 %v3818_v48 }
  0x64   :  { %358 = vmatprep.mubr.bf16.mxu0 %v4342_v0  ;;  %431 = vmatprep.mubr.bf16.mxu1 %v4342_v0 }
  0x66   :  { %690 = vmatpush1.bf16.msra.mxu0 %v3820_v49  ;;  %731 = vmatpush1.bf16.msra.mxu1 %v3822_v50 }
  0x67   :  { %691 = vmatprep.subr.bf16.mxu0 %v3826_v51  ;;  %732 = vmatprep.subr.bf16.mxu1 %v3830_v52 }
  0x69   :  { %359 = vmatmul.mubr.bf16.gmra.mrb[8].mxu0 %v3404_v53  ;;  %432 = vmatmul.mubr.bf16.gmra.mrb[8].mxu1 %v3404_v53 }
  0x6a   :  { %692 = vmatpush1.bf16.msra.mxu0 %v3834_v54  ;;  %733 = vmatpush1.bf16.msra.mxu1 %v3836_v55 }
  0x6b   :  { %693 = vmatprep.subr.bf16.mxu0 %v3838_v56  ;;  %734 = vmatprep.subr.bf16.mxu1 %v3840_v57 }
  0x6c   :  { %368 = vmatprep.mubr.bf16.mxu0 %v4342_v0  ;;  %441 = vmatprep.mubr.bf16.mxu1 %v4342_v0 }
  0x6e   :  { %694 = vmatpush1.bf16.msra.mxu0 %v3846_v58  ;;  %735 = vmatpush1.bf16.msra.mxu1 %v3848_v59 }
  0x6f   :  { %695 = vmatprep.subr.bf16.mxu0 %v3850_v60  ;;  %736 = vmatprep.subr.bf16.mxu1 %v3852_v61 }
  0x71   :  { %369 = vmatmul.mubr.bf16.gmra.mrb[12].mxu0 %v3417_v62  ;;  %442 = vmatmul.mubr.bf16.gmra.mrb[12].mxu1 %v3417_v62 }
  0x72   :  { %696 = vmatpush1.bf16.msra.mxu0 %v3860_v63  ;;  %737 = vmatpush1.bf16.msra.mxu1 %v3862_v1 }
  0x73   :  { %697 = vmatprep.subr.bf16.mxu0 %v3864_v2  ;;  %738 = vmatprep.subr.bf16.mxu1 %v3870_v3 }
  0x74   :  { %715 = vmatprep.mubr.bf16.mxu0 %v4342_v0  ;;  %756 = vmatprep.mubr.bf16.mxu1 %v4342_v0 }
  0x76   :  { %698 = vmatpush1.bf16.msra.mxu0 %v3874_v4  ;;  %739 = vmatpush1.bf16.msra.mxu1 %v3876_v5 }
  0x77   :  { %994 = vmatprep.subr.bf16.mxu0 %v3780_v33  ;;  %1035 = vmatprep.subr.bf16.mxu1 %v3782_v34 }
  0x79   :  { %716 = vmatmul.mubr.bf16.vlgmr.msra.gmra.mrb[16].mxu0 %v4342_v0  ;;  %757 = vmatmul.mubr.bf16.vlgmr.msra.gmra.mrb[16].mxu1 %v4342_v0 }
  0x7a   :  { %995 = vmatpush1.bf16.msra.mxu0 %v3784_v36  ;;  %1036 = vmatpush1.bf16.msra.mxu1 %v3786_v37 }
  0x7b   :  { %996 = vmatprep.subr.bf16.mxu0 %v3790_v38  ;;  %1037 = vmatprep.subr.bf16.mxu1 %v3792_v39 }
  0x7c   :  { %1026 = vmatprep.mubr.bf16.mxu0 %v4342_v0  ;;  %1067 = vmatprep.mubr.bf16.mxu1 %v4342_v0 }
  0x7e   :  { %997 = vmatpush1.bf16.msra.mxu0 %v3794_v40  ;;  %1038 = vmatpush1.bf16.msra.mxu1 %v3798_v41 }
  0x7f   :  { %998 = vmatprep.subr.bf16.mxu0 %v3802_v42  ;;  %1039 = vmatprep.subr.bf16.mxu1 %v3804_v43 }
  0x82   :  { %999 = vmatpush1.bf16.msra.mxu0 %v3808_v45  ;;  %1040 = vmatpush1.bf16.msra.mxu1 %v3810_v46 }
  0x83   :  { %1000 = vmatprep.subr.bf16.mxu0 %v3814_v47  ;;  %1041 = vmatprep.subr.bf16.mxu1 %v3818_v48 }
  0x86   :  { %1001 = vmatpush1.bf16.msra.mxu0 %v3820_v49  ;;  %1042 = vmatpush1.bf16.msra.mxu1 %v3822_v50 }
  0x87   :  { %1002 = vmatprep.subr.bf16.mxu0 %v3826_v51  ;;  %1043 = vmatprep.subr.bf16.mxu1 %v3830_v52 }
  0x8a   :  { %1003 = vmatpush1.bf16.msra.mxu0 %v3834_v54  ;;  %1044 = vmatpush1.bf16.msra.mxu1 %v3836_v55 }
  0x8b   :  { %1004 = vmatprep.subr.bf16.mxu0 %v3838_v56  ;;  %1045 = vmatprep.subr.bf16.mxu1 %v3840_v57 }
  0x8e   :  { %1005 = vmatpush1.bf16.msra.mxu0 %v3846_v58  ;;  %1046 = vmatpush1.bf16.msra.mxu1 %v3848_v59 }
  0x8f   :  { %1006 = vmatprep.subr.bf16.mxu0 %v3850_v60  ;;  %1047 = vmatprep.subr.bf16.mxu1 %v3852_v61 }
  0x92   :  { %1007 = vmatpush1.bf16.msra.mxu0 %v3860_v63  ;;  %1048 = vmatpush1.bf16.msra.mxu1 %v3862_v1 }
  0x93   :  { %1008 = vmatprep.subr.bf16.mxu0 %v3864_v2  ;;  %1049 = vmatprep.subr.bf16.mxu1 %v3870_v3 }
  0x96   :  { %1009 = vmatpush1.bf16.msra.mxu0 %v3874_v4  ;;  %1050 = vmatpush1.bf16.msra.mxu1 %v3876_v5 }
  0x97   :  { %1306 = vmatprep.subr.bf16.mxu0 %v3780_v33  ;;  %1347 = vmatprep.subr.bf16.mxu1 %v3782_v34 }
 0x12c   :  { %v3927_v14 = vpop.f32.mrb[0].mxu0  ;;  %v3929_v15 = vpop.f32.mrb[0].mxu1 }
 0x12d   :  { %v342_v18 = vpop.f32.mrb[1].mxu0  ;;  %v415_v19 = vpop.f32.mrb[1].mxu1 }
 0x12e   :  { %v344_v21 = vpop.f32.mrb[2].mxu0  ;;  %v417_v22 = vpop.f32.mrb[2].mxu1 }
 0x12f   :  { %v3933_v23 = vadd.f32 %v344_v21, %v105_v17  ;;  %v346_v24 = vpop.f32.mrb[3].mxu0  ;;  %v3936_v25 = vadd.f32 %v417_v22, %v3925_v13  ;;  %v419_v26 = vpop.f32.mrb[3].mxu1 }
 0x130   :  { %v3938_v27 = vadd.f32 %v346_v24, %v109_v20  ;;  %v3941_v28 = vadd.f32 %v419_v26, %v3931_v16 }
 0x134   :  { %v350_v29 = vpop.f32.mrb[4].mxu0  ;;  %v423_v30 = vpop.f32.mrb[4].mxu1 }
 0x135   :  { %v3943_v31 = vadd.f32 %v350_v29, %v105_v17  ;;  %v352_v32 = vpop.f32.mrb[5].mxu0  ;;  %v3946_v35 = vadd.f32 %v423_v30, %v3925_v13  ;;  %v425_v44 = vpop.f32.mrb[5].mxu1 }
 0x136   :  { %v3948_v53 = vadd.f32 %v352_v32, %v109_v20  ;;  %v354_v62 = vpop.f32.mrb[6].mxu0  ;;  %v3951_v6 = vadd.f32 %v425_v44, %v3931_v16  ;;  %v427_v7 = vpop.f32.mrb[6].mxu1 }
 0x137   :  { %v3953_v8 = vadd.f32 %v354_v62, %v105_v17  ;;  %v356_v9 = vpop.f32.mrb[7].mxu0  ;;  %v3956_v10 = vadd.f32 %v427_v7, %v3925_v13  ;;  %v429_v11 = vpop.f32.mrb[7].mxu1 }
 0x138   :  { %4344 = vst [vmem:[#allocation13_spill] sm:$0xff] %v3951_v6  ;;  %v3958_v12 = vadd.f32 %v356_v9, %v109_v20  ;;  %v3961_v21 = vadd.f32 %v429_v11, %v3931_v16 }
 0x139   :  { %4345 = vst [vmem:[#allocation14_spill] sm:$0xff] %v3953_v8  ;;  %4346 = vst [vmem:[#allocation15_spill] sm:$0xff] %v3956_v10 }
 0x13a   :  { %4347 = vst [vmem:[#allocation16_spill] sm:$0xff] %v3958_v12  ;;  %4348 = vst [vmem:[#allocation17_spill] sm:$0xff] %v3961_v21 }
 0x13c   :  { %v360_v22 = vpop.f32.mrb[8].mxu0  ;;  %v433_v24 = vpop.f32.mrb[8].mxu1 }
 0x13d   :  { %v3963_v26 = vadd.f32 %v360_v22, %v105_v17  ;;  %v362_v29 = vpop.f32.mrb[9].mxu0  ;;  %v3966_v30 = vadd.f32 %v433_v24, %v3925_v13  ;;  %v435_v32 = vpop.f32.mrb[9].mxu1 }
 0x13e   :  { %v3968_v44 = vadd.f32 %v362_v29, %v109_v20  ;;  %v364_v62 = vpop.f32.mrb[10].mxu0  ;;  %v3971_v7 = vadd.f32 %v435_v32, %v3931_v16  ;;  %v437_v9 = vpop.f32.mrb[10].mxu1 }
 0x13f   :  { %4349 = vst [vmem:[#allocation18_spill] sm:$0xff] %v3963_v26  ;;  %4350 = vst [vmem:[#allocation19_spill] sm:$0xff] %v3966_v30  ;;  %v3973_v0 = vadd.f32 %v364_v62, %v105_v17  ;;  %v366_v11 = vpop.f32.mrb[11].mxu0  ;;  %v3976_v21 = vadd.f32 %v437_v9, %v3925_v13  ;;  %v439_v22 = vpop.f32.mrb[11].mxu1 }
 0x140   :  { %4351 = vst [vmem:[#allocation20_spill] sm:$0xff] %v3968_v44  ;;  %4352 = vst [vmem:[#allocation21_spill] sm:$0xff] %v3971_v7  ;;  %v3978_v26 = vadd.f32 %v366_v11, %v109_v20  ;;  %v3981_v24 = vadd.f32 %v439_v22, %v3931_v16 }
 0x141   :  { %4353 = vst [vmem:[#allocation22_spill] sm:$0xff] %v3973_v0  ;;  %4354 = vst [vmem:[#allocation23_spill] sm:$0xff] %v3976_v21 }
 0x142   :  { %4355 = vst [vmem:[#allocation24_spill] sm:$0xff] %v3978_v26  ;;  %4356 = vst [vmem:[#allocation25_spill] sm:$0xff] %v3981_v24 }
 0x144   :  { %v370_v30 = vpop.f32.mrb[12].mxu0  ;;  %v443_v29 = vpop.f32.mrb[12].mxu1 }
 0x145   :  { %v3983_v44 = vadd.f32 %v370_v30, %v105_v17  ;;  %v372_v12 = vpop.f32.mrb[13].mxu0  ;;  %v3986_v32 = vadd.f32 %v443_v29, %v3925_v13  ;;  %v445_v62 = vpop.f32.mrb[13].mxu1 }
 0x146   :  { %v3988_v0 = vadd.f32 %v372_v12, %v109_v20  ;;  %v374_v7 = vpop.f32.mrb[14].mxu0  ;;  %v3991_v9 = vadd.f32 %v445_v62, %v3931_v16  ;;  %v447_v11 = vpop.f32.mrb[14].mxu1  ;;  %v341_v12 = vadd.f32 %v3927_v14, %v105_v17  ;;  %v343_v62 = vadd.f32 %v342_v18, %v109_v20 }
 0x147   :  { %4357 = vst [vmem:[#allocation26_spill] sm:$0xff] %v3983_v44  ;;  %4358 = vst [vmem:[#allocation27_spill] sm:$0xff] %v3986_v32  ;;  %v3993_v26 = vadd.f32 %v374_v7, %v105_v17  ;;  %v376_v22 = vpop.f32.mrb[15].mxu0  ;;  %v3996_v24 = vadd.f32 %v447_v11, %v3925_v13  ;;  %v449_v30 = vpop.f32.mrb[15].mxu1 }
 0x148   :  { %4359 = vst [vmem:[#allocation28_spill] sm:$0xff] %v3988_v0  ;;  %4360 = vst [vmem:[#allocation29_spill] sm:$0xff] %v3991_v9  ;;  %v3998_v44 = vadd.f32 %v376_v22, %v109_v20  ;;  %v4001_v29 = vadd.f32 %v449_v30, %v3931_v16  ;;  %v414_v0 = vadd.f32 %v3929_v15, %v3925_v13 }
 0x149   :  { %4361 = vst [vmem:[#allocation30_spill] sm:$0xff] %v3993_v26  ;;  %4362 = vst [vmem:[#allocation31_spill] sm:$0xff] %v3996_v24  ;;  %v416_v9 = vadd.f32 %v415_v19, %v3931_v16 }
 0x14a   :  { %4363 = vst [vmem:[#allocation32_spill] sm:$0xff] %v3998_v44  ;;  %4364 = vst [vmem:[#allocation33_spill] sm:$0xff] %v4001_v29 }
 0x14c   :  { %v717_v7 = vpop.f32.mrb[16].mxu0  ;;  %v758_v26 = vpop.f32.mrb[16].mxu1 }
 0x14d   :  { %v765_v32 = vadd.f32 %v717_v7, %v341_v12  ;;  %v767_v21 = vadd.f32 %v758_v26, %v414_v0  ;;  %v719_v11 = vpop.f32.mrb[17].mxu0  ;;  %v760_v24 = vpop.f32.mrb[17].mxu1 }
 0x14e   :  { %v766_v10 = vadd.f32 %v719_v11, %v343_v62  ;;  %v768_v22 = vadd.f32 %v760_v24, %v416_v9  ;;  %v721_v44 = vpop.f32.mrb[18].mxu0  ;;  %v762_v8 = vpop.f32.mrb[18].mxu1 }
 0x14f   :  { %v3071_v30 = vmul.f32 -1.442695, %v765_v32  ;;  %v722_v29 = vpop.f32.mrb[19].mxu0  ;;  %v763_v6 = vpop.f32.mrb[19].mxu1 }
 0x150   :  { %v3072_v14 = vmul.f32 -1.442695, %v766_v10  ;;  %v3073_v13 = vmul.f32 -1.442695, %v768_v22  ;;  %v4365_v29 = vmov 0  }
 0x151   :  { %3478 = vpow2.f32 %v3071_v30 }
 0x152   :  { %3480 = vpow2.f32 %v3072_v14 }
 0x153   :  { %3482 = vpow2.f32 %v3073_v13 }
 0x154   :  { %3484 = vtanh.f32 %v767_v21 }
 0x15b   :  { %v3479_v15 = vpop.eup %3478 }
 0x15c   :  { %v3481_v17 = vpop.eup %3480  ;;  %v772_v16 = vadd.f32 1.0, %v3479_v15 }
 0x15d   :  { %v778_v18 = vadd.f32 1.0, %v3481_v17  ;;  %v3483_v0 = vpop.eup %3482 }
 0x15e   :  { %3486 = vrcp.f32 %v772_v16  ;;  %v3485_v19 = vpop.eup %3484  ;;  %v785_v44 = vadd.f32 1.0, %v3483_v0 }
 0x15f   :  { %3488 = vrcp.f32 %v778_v18 }
 0x160   :  { %3490 = vrcp.f32 %v785_v44 }
 0x168   :  { %v3487_v20 = vpop.eup %3486 }
 0x169   :  { %v3489_v26 = vpop.eup %3488  ;;  %v789_v8 = vmul.f32 %v3487_v20, %v3485_v19 }
 0x16a   :  { %v788_v24 = vmul.f32 0.0, %v3489_v26  ;;  %v3491_v10 = vpop.eup %3490 }
 0x16c   :  { %v4007_v6 = vadd.f32 %v789_v8, %v788_v24 }
 0x16e   :  { %3492 = vtanh.f32 %v4007_v6 }
 0x178   :  { %v3493_v32 = vpop.eup %3492 }
 0x179   :  { %v792_v9 = vmul.f32 %v3493_v32, %v3491_v10 }
 0x17b   :  { %793 = vst [vmem:[#allocation9] sm:$0xff] %v792_v9  ;;  %v801_v21 = vpack.c.bf16 %v792_v9, %v792_v9 }
 0x17d   :  { %1027 = vmatmul.mubr.bf16.vlgmr.msra.gmra.mrb[20].mxu0 %v801_v21  ;;  %1068 = vmatmul.mubr.bf16.vlgmr.msra.gmra.mrb[20].mxu1 %v801_v21 }
 0x17e   :  { %1307 = vmatpush1.bf16.msra.mxu0 %v3784_v36  ;;  %1348 = vmatpush1.bf16.msra.mxu1 %v3786_v37 }
 0x17f   :  { %1308 = vmatprep.subr.bf16.mxu0 %v3790_v38  ;;  %1349 = vmatprep.subr.bf16.mxu1 %v3792_v39 }
 0x180   :  { %1338 = vmatprep.mubr.bf16.mxu0 %v4365_v29  ;;  %1379 = vmatprep.mubr.bf16.mxu1 %v4365_v29 }
 0x182   :  { %1309 = vmatpush1.bf16.msra.mxu0 %v3794_v40  ;;  %1350 = vmatpush1.bf16.msra.mxu1 %v3798_v41 }
 0x183   :  { %1310 = vmatprep.subr.bf16.mxu0 %v3802_v42  ;;  %1351 = vmatprep.subr.bf16.mxu1 %v3804_v43 }
 0x186   :  { %1311 = vmatpush1.bf16.msra.mxu0 %v3808_v45  ;;  %1352 = vmatpush1.bf16.msra.mxu1 %v3810_v46 }
 0x187   :  { %1312 = vmatprep.subr.bf16.mxu0 %v3814_v47  ;;  %1353 = vmatprep.subr.bf16.mxu1 %v3818_v48 }
 0x18a   :  { %1313 = vmatpush1.bf16.msra.mxu0 %v3820_v49  ;;  %1354 = vmatpush1.bf16.msra.mxu1 %v3822_v50 }
 0x18b   :  { %1314 = vmatprep.subr.bf16.mxu0 %v3826_v51  ;;  %1355 = vmatprep.subr.bf16.mxu1 %v3830_v52 }
 0x18e   :  { %1315 = vmatpush1.bf16.msra.mxu0 %v3834_v54  ;;  %1356 = vmatpush1.bf16.msra.mxu1 %v3836_v55 }
 0x18f   :  { %1316 = vmatprep.subr.bf16.mxu0 %v3838_v56  ;;  %1357 = vmatprep.subr.bf16.mxu1 %v3840_v57 }
 0x192   :  { %1317 = vmatpush1.bf16.msra.mxu0 %v3846_v58  ;;  %1358 = vmatpush1.bf16.msra.mxu1 %v3848_v59 }
 0x193   :  { %1318 = vmatprep.subr.bf16.mxu0 %v3850_v60  ;;  %1359 = vmatprep.subr.bf16.mxu1 %v3852_v61 }
 0x196   :  { %1319 = vmatpush1.bf16.msra.mxu0 %v3860_v63  ;;  %1360 = vmatpush1.bf16.msra.mxu1 %v3862_v1 }
 0x197   :  { %1320 = vmatprep.subr.bf16.mxu0 %v3864_v2  ;;  %1361 = vmatprep.subr.bf16.mxu1 %v3870_v3 }
 0x19a   :  { %1321 = vmatpush1.bf16.msra.mxu0 %v3874_v4  ;;  %1362 = vmatpush1.bf16.msra.mxu1 %v3876_v5 }
 0x19b   :  { %1618 = vmatprep.subr.bf16.mxu0 %v3780_v33  ;;  %1659 = vmatprep.subr.bf16.mxu1 %v3782_v34 }
 0x250   :  { %v1028_v12 = vpop.f32.mrb[20].mxu0  ;;  %v1069_v62 = vpop.f32.mrb[20].mxu1 }
 0x251   :  { %v1076_v7 = vadd.f32 %v1028_v12, %v3933_v23  ;;  %v1078_v11 = vadd.f32 %v1069_v62, %v3936_v25  ;;  %v1030_v22 = vpop.f32.mrb[21].mxu0  ;;  %v1071_v30 = vpop.f32.mrb[21].mxu1 }
 0x252   :  { %v1077_v14 = vadd.f32 %v1030_v22, %v3938_v27  ;;  %v1079_v13 = vadd.f32 %v1071_v30, %v3941_v28  ;;  %v1032_v15 = vpop.f32.mrb[22].mxu0  ;;  %v1073_v17 = vpop.f32.mrb[22].mxu1  ;;  %v4106_v22 = vld [vmem:[#allocation8 + $0x24] ss:$16 sps:$4 sm:$0xff]   ;;  %v4108_v30 = vld [vmem:[#allocation8 + $0x2c] ss:$16 sps:$4 sm:$0xff]  }
 0x253   :  { %v3106_v16 = vmul.f32 -1.442695, %v1076_v7  ;;  %v1033_v18 = vpop.f32.mrb[23].mxu0  ;;  %v1074_v0 = vpop.f32.mrb[23].mxu1  ;;  %v4098_v7 = vld [vmem:[#allocation8] ss:$16 sps:$4 sm:$0xff]  }
 0x254   :  { %v3107_v33 = vmul.f32 -1.442695, %v1077_v14  ;;  %v3108_v34 = vmul.f32 -1.442695, %v1079_v13  ;;  %v4110_v14 = vld [vmem:[#allocation8 + $0x20] ss:$16 sps:$4 sm:$0xff]  }
 0x255   :  { %3494 = vpow2.f32 %v3106_v16  ;;  %v4112_v13 = vld [vmem:[#allocation8 + $0x28] ss:$16 sps:$4 sm:$0xff]   ;;  %v4118_v15 = vld [vmem:[#allocation8 + $0x44] ss:$16 sps:$4 sm:$0xff]   ;;  %v4120_v17 = vld [vmem:[#allocation8 + $0x4c] ss:$16 sps:$4 sm:$0xff]  }
 0x256   :  { %3496 = vpow2.f32 %v3107_v33  ;;  %v4122_v16 = vld [vmem:[#allocation8 + $0x40] ss:$16 sps:$4 sm:$0xff]   ;;  %v4124_v18 = vld [vmem:[#allocation8 + $0x48] ss:$16 sps:$4 sm:$0xff]   ;;  %v4130_v0 = vld [vmem:[#allocation8 + $0x64] ss:$16 sps:$4 sm:$0xff]  }
 0x257   :  { %3498 = vpow2.f32 %v3108_v34  ;;  %v4132_v33 = vld [vmem:[#allocation8 + $0x6c] ss:$16 sps:$4 sm:$0xff]   ;;  %v4134_v34 = vld [vmem:[#allocation8 + $0x60] ss:$16 sps:$4 sm:$0xff]  }
 0x258   :  { %3500 = vtanh.f32 %v1078_v11  ;;  %v4100_v11 = vld [vmem:[#allocation8 + $0x8] ss:$16 sps:$4 sm:$0xff]  }
 0x25f   :  { %v3495_v19 = vpop.eup %3494 }
 0x260   :  { %v3497_v20 = vpop.eup %3496  ;;  %v1083_v23 = vadd.f32 1.0, %v3495_v19  ;;  %v4136_v19 = vld [vmem:[#allocation8 + $0x68] ss:$16 sps:$4 sm:$0xff]  }
 0x261   :  { %v1089_v25 = vadd.f32 1.0, %v3497_v20  ;;  %v3499_v27 = vpop.eup %3498  ;;  %v4142_v20 = vld [vmem:[#allocation8 + $0x84] ss:$16 sps:$4 sm:$0xff]  }
 0x262   :  { %3502 = vrcp.f32 %v1083_v23  ;;  %v3501_v26 = vpop.eup %3500  ;;  %v1096_v24 = vadd.f32 1.0, %v3499_v27  ;;  %v4144_v23 = vld [vmem:[#allocation8 + $0x8c] ss:$16 sps:$4 sm:$0xff]   ;;  %v4148_v27 = vld [vmem:[#allocation8 + $0x88] ss:$16 sps:$4 sm:$0xff]  }
 0x263   :  { %3504 = vrcp.f32 %v1089_v25  ;;  %v4146_v25 = vld [vmem:[#allocation8 + $0x80] ss:$16 sps:$4 sm:$0xff]  }
 0x264   :  { %3506 = vrcp.f32 %v1096_v24  ;;  %v4163_v24 = vld [vmem:[#allocation8 + $0xc4] ss:$16 sps:$4 sm:$0xff]  }
 0x26c   :  { %v3503_v28 = vpop.eup %3502 }
 0x26d   :  { %v3505_v8 = vpop.eup %3504  ;;  %v1100_v44 = vmul.f32 %v3503_v28, %v3501_v26  ;;  %v4152_v26 = vld [vmem:[#allocation8 + $0xa4] ss:$16 sps:$4 sm:$0xff]   ;;  %v4156_v28 = vld [vmem:[#allocation8 + $0xa0] ss:$16 sps:$4 sm:$0xff]  }
 0x26e   :  { %v1099_v10 = vmul.f32 %v3505_v8, %v4007_v6  ;;  %v3507_v9 = vpop.eup %3506  ;;  %v4096_v6 = vld [vmem:[#allocation8 + $0xc] ss:$16 sps:$4 sm:$0xff]   ;;  %v4158_v8 = vld [vmem:[#allocation8 + $0xa8] ss:$16 sps:$4 sm:$0xff]  }
 0x270   :  { %v4049_v32 = vadd.f32 %v1100_v44, %v1099_v10  ;;  %v4160_v44 = vld [vmem:[#allocation8 + $0xac] ss:$16 sps:$4 sm:$0xff]  }
 0x271   :  { %v4165_v10 = vld [vmem:[#allocation8 + $0xcc] ss:$16 sps:$4 sm:$0xff]  }
 0x272   :  { %3508 = vtanh.f32 %v4049_v32 }
 0x27c   :  { %v3509_v21 = vpop.eup %3508 }
 0x27d   :  { %v1103_v12 = vmul.f32 %v3509_v21, %v3507_v9  ;;  %v4172_v9 = vld [vmem:[#allocation8 + $0xc8] ss:$16 sps:$4 sm:$0xff]   ;;  %v4176_v21 = vld [vmem:[#allocation8 + $0xe4] ss:$16 sps:$4 sm:$0xff]  }
 0x27f   :  { %1105 = vst [vmem:[#allocation9 + $0x8] sm:$0xff] %v1103_v12  ;;  %v1113_v62 = vpack.c.bf16 %v1103_v12, %v1103_v12  ;;  %v4178_v12 = vld [vmem:[#allocation8 + $0xec] ss:$16 sps:$4 sm:$0xff]  }
 0x281   :  { %1339 = vmatmul.mubr.bf16.vlgmr.msra.gmra.mrb[24].mxu0 %v1113_v62  ;;  %1380 = vmatmul.mubr.bf16.vlgmr.msra.gmra.mrb[24].mxu1 %v1113_v62  ;;  %v4182_v62 = vld [vmem:[#allocation8 + $0xe0] ss:$16 sps:$4 sm:$0xff]  }
 0x282   :  { %1619 = vmatpush1.bf16.msra.mxu0 %v3784_v36  ;;  %1660 = vmatpush1.bf16.msra.mxu1 %v3786_v37 }
 0x283   :  { %1620 = vmatprep.subr.bf16.mxu0 %v3790_v38  ;;  %1661 = vmatprep.subr.bf16.mxu1 %v3792_v39 }
 0x284   :  { %1650 = vmatprep.mubr.bf16.mxu0 %v4365_v29  ;;  %1691 = vmatprep.mubr.bf16.mxu1 %v4365_v29 }
 0x286   :  { %1621 = vmatpush1.bf16.msra.mxu0 %v3794_v40  ;;  %1662 = vmatpush1.bf16.msra.mxu1 %v3798_v41 }
 0x287   :  { %1622 = vmatprep.subr.bf16.mxu0 %v3802_v42  ;;  %1663 = vmatprep.subr.bf16.mxu1 %v3804_v43  ;;  %v4366_v43 = vld [vmem:[#allocation13_spill] sm:$0xff] }
 0x28a   :  { %1623 = vmatpush1.bf16.msra.mxu0 %v3808_v45  ;;  %1664 = vmatpush1.bf16.msra.mxu1 %v3810_v46 }
 0x28b   :  { %1624 = vmatprep.subr.bf16.mxu0 %v3814_v47  ;;  %1665 = vmatprep.subr.bf16.mxu1 %v3818_v48 }
 0x28e   :  { %1625 = vmatpush1.bf16.msra.mxu0 %v3820_v49  ;;  %1666 = vmatpush1.bf16.msra.mxu1 %v3822_v50 }
 0x28f   :  { %1626 = vmatprep.subr.bf16.mxu0 %v3826_v51  ;;  %1667 = vmatprep.subr.bf16.mxu1 %v3830_v52 }
 0x292   :  { %1627 = vmatpush1.bf16.msra.mxu0 %v3834_v54  ;;  %1668 = vmatpush1.bf16.msra.mxu1 %v3836_v55 }
 0x293   :  { %1628 = vmatprep.subr.bf16.mxu0 %v3838_v56  ;;  %1669 = vmatprep.subr.bf16.mxu1 %v3840_v57 }
 0x296   :  { %1629 = vmatpush1.bf16.msra.mxu0 %v3846_v58  ;;  %1670 = vmatpush1.bf16.msra.mxu1 %v3848_v59 }
 0x297   :  { %1630 = vmatprep.subr.bf16.mxu0 %v3850_v60  ;;  %1671 = vmatprep.subr.bf16.mxu1 %v3852_v61 }
 0x29a   :  { %1631 = vmatpush1.bf16.msra.mxu0 %v3860_v63  ;;  %1672 = vmatpush1.bf16.msra.mxu1 %v3862_v1 }
 0x29b   :  { %1632 = vmatprep.subr.bf16.mxu0 %v3864_v2  ;;  %1673 = vmatprep.subr.bf16.mxu1 %v3870_v3 }
 0x29e   :  { %1633 = vmatpush1.bf16.msra.mxu0 %v3874_v4  ;;  %1674 = vmatpush1.bf16.msra.mxu1 %v3876_v5 }
 0x29f   :  { %1971 = vmatprep.subr.bf16.mxu1 %v4096_v6 }
 0x354   :  { %v1340_v36 = vpop.f32.mrb[24].mxu0  ;;  %v1381_v37 = vpop.f32.mrb[24].mxu1 }
 0x355   :  { %v1388_v38 = vadd.f32 %v1340_v36, %v3943_v31  ;;  %v1390_v39 = vadd.f32 %v1381_v37, %v3946_v35  ;;  %v1342_v40 = vpop.f32.mrb[25].mxu0  ;;  %v1383_v41 = vpop.f32.mrb[25].mxu1  ;;  %v4184_v36 = vld [vmem:[#allocation8 + $0xe8] ss:$16 sps:$4 sm:$0xff]  }
 0x356   :  { %v1389_v42 = vadd.f32 %v1342_v40, %v3948_v53  ;;  %v1391_v45 = vadd.f32 %v1383_v41, %v4366_v43  ;;  %v1344_v46 = vpop.f32.mrb[26].mxu0  ;;  %v1385_v47 = vpop.f32.mrb[26].mxu1  ;;  %v4094_v53 = vld [vmem:[#allocation8 + $0x4] ss:$16 sps:$4 sm:$0xff]  }
 0x357   :  { %v3141_v48 = vmul.f32 -1.442695, %v1388_v38  ;;  %v1345_v49 = vpop.f32.mrb[27].mxu0  ;;  %v1386_v50 = vpop.f32.mrb[27].mxu1  ;;  %1930 = vmatprep.subr.bf16.mxu0 %v4094_v53  ;;  %v4368_v41 = vld [vmem:[#allocation15_spill] sm:$0xff]  ;;  %v4369_v46 = vld [vmem:[#allocation16_spill] sm:$0xff] }
 0x358   :  { %v3142_v51 = vmul.f32 -1.442695, %v1389_v42  ;;  %v3143_v52 = vmul.f32 -1.442695, %v1391_v45 }
 0x359   :  { %3510 = vpow2.f32 %v3141_v48  ;;  %v4370_v48 = vld [vmem:[#allocation17_spill] sm:$0xff] }
 0x35a   :  { %3512 = vpow2.f32 %v3142_v51 }
 0x35b   :  { %3514 = vpow2.f32 %v3143_v52 }
 0x35c   :  { %3516 = vtanh.f32 %v1390_v39  ;;  %v4367_v39 = vld [vmem:[#allocation14_spill] sm:$0xff] }
 0x363   :  { %v3511_v54 = vpop.eup %3510 }
 0x364   :  { %v3513_v55 = vpop.eup %3512  ;;  %v1395_v56 = vadd.f32 1.0, %v3511_v54 }
 0x365   :  { %v1401_v57 = vadd.f32 1.0, %v3513_v55  ;;  %v3515_v58 = vpop.eup %3514 }
 0x366   :  { %3518 = vrcp.f32 %v1395_v56  ;;  %v3517_v59 = vpop.eup %3516  ;;  %v1408_v1 = vadd.f32 1.0, %v3515_v58 }
 0x367   :  { %3520 = vrcp.f32 %v1401_v57 }
 0x368   :  { %3522 = vrcp.f32 %v1408_v1 }
 0x370   :  { %v3519_v60 = vpop.eup %3518 }
 0x371   :  { %v3521_v61 = vpop.eup %3520  ;;  %v1412_v63 = vmul.f32 %v3519_v60, %v3517_v59 }
 0x372   :  { %v1411_v2 = vmul.f32 %v3521_v61, %v4049_v32  ;;  %v3523_v4 = vpop.eup %3522  ;;  %v4170_v32 = vld [vmem:[#allocation8 + $0xc0] ss:$16 sps:$4 sm:$0xff]  }
 0x374   :  { %v4089_v3 = vadd.f32 %v1412_v63, %v1411_v2 }
 0x376   :  { %3524 = vtanh.f32 %v4089_v3 }
 0x380   :  { %v3525_v5 = vpop.eup %3524 }
 0x381   :  { %v1415_v31 = vmul.f32 %v3525_v5, %v3523_v4 }
 0x383   :  { %1417 = vst [vmem:[#allocation9 + $0x10] sm:$0xff] %v1415_v31  ;;  %v1425_v35 = vpack.c.bf16 %v1415_v31, %v1415_v31 }
 0x385   :  { %1651 = vmatmul.mubr.bf16.vlgmr.msra.gmra.mrb[28].mxu0 %v1425_v35  ;;  %1692 = vmatmul.mubr.bf16.vlgmr.msra.gmra.mrb[28].mxu1 %v1425_v35 }
 0x386   :  { %1962 = vmatprep.mubr.bf16.mxu0 %v4365_v29  ;;  %2003 = vmatprep.mubr.bf16.mxu1 %v4365_v29 }
 0x387   :  { %1931 = vmatpush1.bf16.msra.mxu0 %v4098_v7  ;;  %1972 = vmatpush1.bf16.msra.mxu1 %v4100_v11 }
 0x388   :  { %1932 = vmatprep.subr.bf16.mxu0 %v4106_v22  ;;  %1973 = vmatprep.subr.bf16.mxu1 %v4108_v30 }
 0x38b   :  { %1933 = vmatpush1.bf16.msra.mxu0 %v4110_v14  ;;  %1974 = vmatpush1.bf16.msra.mxu1 %v4112_v13 }
 0x38c   :  { %1934 = vmatprep.subr.bf16.mxu0 %v4118_v15  ;;  %1975 = vmatprep.subr.bf16.mxu1 %v4120_v17 }
 0x38f   :  { %1935 = vmatpush1.bf16.msra.mxu0 %v4122_v16  ;;  %1976 = vmatpush1.bf16.msra.mxu1 %v4124_v18 }
 0x390   :  { %1936 = vmatprep.subr.bf16.mxu0 %v4130_v0  ;;  %1977 = vmatprep.subr.bf16.mxu1 %v4132_v33 }
 0x393   :  { %1937 = vmatpush1.bf16.msra.mxu0 %v4134_v34  ;;  %1978 = vmatpush1.bf16.msra.mxu1 %v4136_v19 }
 0x394   :  { %1938 = vmatprep.subr.bf16.mxu0 %v4142_v20  ;;  %1979 = vmatprep.subr.bf16.mxu1 %v4144_v23 }
 0x397   :  { %1939 = vmatpush1.bf16.msra.mxu0 %v4146_v25  ;;  %1980 = vmatpush1.bf16.msra.mxu1 %v4148_v27 }
 0x398   :  { %1940 = vmatprep.subr.bf16.mxu0 %v4152_v26  ;;  %1981 = vmatprep.subr.bf16.mxu1 %v4160_v44 }
 0x39b   :  { %1941 = vmatpush1.bf16.msra.mxu0 %v4156_v28  ;;  %1982 = vmatpush1.bf16.msra.mxu1 %v4158_v8 }
 0x39c   :  { %1942 = vmatprep.subr.bf16.mxu0 %v4163_v24  ;;  %1983 = vmatprep.subr.bf16.mxu1 %v4165_v10 }
 0x39f   :  { %1943 = vmatpush1.bf16.msra.mxu0 %v4170_v32  ;;  %1984 = vmatpush1.bf16.msra.mxu1 %v4172_v9 }
 0x3a0   :  { %1944 = vmatprep.subr.bf16.mxu0 %v4176_v21  ;;  %1985 = vmatprep.subr.bf16.mxu1 %v4178_v12 }
 0x3a3   :  { %1945 = vmatpush1.bf16.msra.mxu0 %v4182_v62  ;;  %1986 = vmatpush1.bf16.msra.mxu1 %v4184_v36 }
 0x3a4   :  { %2242 = vmatprep.subr.bf16.mxu0 %v4094_v53  ;;  %2283 = vmatprep.subr.bf16.mxu1 %v4096_v6 }
 0x458   :  { %v1652_v37 = vpop.f32.mrb[28].mxu0  ;;  %v1693_v38 = vpop.f32.mrb[28].mxu1 }
 0x459   :  { %v1700_v40 = vadd.f32 %v1652_v37, %v4367_v39  ;;  %v1702_v42 = vadd.f32 %v1693_v38, %v4368_v41  ;;  %v1654_v43 = vpop.f32.mrb[29].mxu0  ;;  %v1695_v45 = vpop.f32.mrb[29].mxu1 }
 0x45a   :  { %v1701_v47 = vadd.f32 %v1654_v43, %v4369_v46  ;;  %v1703_v49 = vadd.f32 %v1695_v45, %v4370_v48  ;;  %v1656_v50 = vpop.f32.mrb[30].mxu0  ;;  %v1697_v51 = vpop.f32.mrb[30].mxu1  ;;  %v4371_v43 = vld [vmem:[#allocation18_spill] sm:$0xff]  ;;  %v4372_v46 = vld [vmem:[#allocation19_spill] sm:$0xff] }
 0x45b   :  { %v3176_v52 = vmul.f32 -1.442695, %v1700_v40  ;;  %v1657_v54 = vpop.f32.mrb[31].mxu0  ;;  %v1698_v55 = vpop.f32.mrb[31].mxu1  ;;  %v4373_v50 = vld [vmem:[#allocation20_spill] sm:$0xff] }
 0x45c   :  { %v3177_v56 = vmul.f32 -1.442695, %v1701_v47  ;;  %v3178_v57 = vmul.f32 -1.442695, %v1703_v49 }
 0x45d   :  { %3526 = vpow2.f32 %v3176_v52  ;;  %v4374_v52 = vld [vmem:[#allocation21_spill] sm:$0xff] }
 0x45e   :  { %3528 = vpow2.f32 %v3177_v56 }
 0x45f   :  { %3530 = vpow2.f32 %v3178_v57 }
 0x460   :  { %3532 = vtanh.f32 %v1702_v42 }
 0x467   :  { %v3527_v58 = vpop.eup %3526 }
 0x468   :  { %v3529_v59 = vpop.eup %3528  ;;  %v1707_v60 = vadd.f32 1.0, %v3527_v58 }
 0x469   :  { %v1713_v61 = vadd.f32 1.0, %v3529_v59  ;;  %v3531_v63 = vpop.eup %3530 }
 0x46a   :  { %3534 = vrcp.f32 %v1707_v60  ;;  %v3533_v1 = vpop.eup %3532  ;;  %v1720_v31 = vadd.f32 1.0, %v3531_v63 }
 0x46b   :  { %3536 = vrcp.f32 %v1713_v61 }
 0x46c   :  { %3538 = vrcp.f32 %v1720_v31 }
 0x474   :  { %v3535_v2 = vpop.eup %3534 }
 0x475   :  { %v3537_v4 = vpop.eup %3536  ;;  %v1724_v5 = vmul.f32 %v3535_v2, %v3533_v1 }
 0x476   :  { %v1723_v35 = vmul.f32 %v3537_v4, %v4089_v3  ;;  %v3539_v38 = vpop.eup %3538 }
 0x478   :  { %v4197_v37 = vadd.f32 %v1724_v5, %v1723_v35 }
 0x47a   :  { %3540 = vtanh.f32 %v4197_v37 }
 0x484   :  { %v3541_v39 = vpop.eup %3540 }
 0x485   :  { %v1727_v40 = vmul.f32 %v3541_v39, %v3539_v38 }
 0x487   :  { %1729 = vst [vmem:[#allocation9 + $0x18] sm:$0xff] %v1727_v40  ;;  %v1737_v41 = vpack.c.bf16 %v1727_v40, %v1727_v40 }
 0x489   :  { %1963 = vmatmul.mubr.bf16.vlgmr.msra.gmra.mrb[32].mxu0 %v1737_v41  ;;  %2004 = vmatmul.mubr.bf16.vlgmr.msra.gmra.mrb[32].mxu1 %v1737_v41 }
 0x48a   :  { %2243 = vmatpush1.bf16.msra.mxu0 %v4098_v7  ;;  %2284 = vmatpush1.bf16.msra.mxu1 %v4100_v11 }
 0x48b   :  { %2244 = vmatprep.subr.bf16.mxu0 %v4106_v22  ;;  %2285 = vmatprep.subr.bf16.mxu1 %v4108_v30 }
 0x48c   :  { %2274 = vmatprep.mubr.bf16.mxu0 %v4365_v29  ;;  %2315 = vmatprep.mubr.bf16.mxu1 %v4365_v29 }
 0x48e   :  { %2245 = vmatpush1.bf16.msra.mxu0 %v4110_v14  ;;  %2286 = vmatpush1.bf16.msra.mxu1 %v4112_v13 }
 0x48f   :  { %2246 = vmatprep.subr.bf16.mxu0 %v4118_v15  ;;  %2287 = vmatprep.subr.bf16.mxu1 %v4120_v17 }
 0x492   :  { %2247 = vmatpush1.bf16.msra.mxu0 %v4122_v16  ;;  %2288 = vmatpush1.bf16.msra.mxu1 %v4124_v18 }
 0x493   :  { %2248 = vmatprep.subr.bf16.mxu0 %v4130_v0  ;;  %2289 = vmatprep.subr.bf16.mxu1 %v4132_v33 }
 0x496   :  { %2249 = vmatpush1.bf16.msra.mxu0 %v4134_v34  ;;  %2290 = vmatpush1.bf16.msra.mxu1 %v4136_v19 }
 0x497   :  { %2250 = vmatprep.subr.bf16.mxu0 %v4142_v20  ;;  %2291 = vmatprep.subr.bf16.mxu1 %v4144_v23 }
 0x49a   :  { %2251 = vmatpush1.bf16.msra.mxu0 %v4146_v25  ;;  %2292 = vmatpush1.bf16.msra.mxu1 %v4148_v27 }
 0x49b   :  { %2252 = vmatprep.subr.bf16.mxu0 %v4152_v26  ;;  %2293 = vmatprep.subr.bf16.mxu1 %v4160_v44 }
 0x49e   :  { %2253 = vmatpush1.bf16.msra.mxu0 %v4156_v28  ;;  %2294 = vmatpush1.bf16.msra.mxu1 %v4158_v8 }
 0x49f   :  { %2254 = vmatprep.subr.bf16.mxu0 %v4163_v24  ;;  %2295 = vmatprep.subr.bf16.mxu1 %v4165_v10 }
 0x4a2   :  { %2255 = vmatpush1.bf16.msra.mxu0 %v4170_v32  ;;  %2296 = vmatpush1.bf16.msra.mxu1 %v4172_v9 }
 0x4a3   :  { %2256 = vmatprep.subr.bf16.mxu0 %v4176_v21  ;;  %2297 = vmatprep.subr.bf16.mxu1 %v4178_v12 }
 0x4a6   :  { %2257 = vmatpush1.bf16.msra.mxu0 %v4182_v62  ;;  %2298 = vmatpush1.bf16.msra.mxu1 %v4184_v36 }
 0x4a7   :  { %2554 = vmatprep.subr.bf16.mxu0 %v4094_v53  ;;  %2595 = vmatprep.subr.bf16.mxu1 %v4096_v6 }
 0x55c   :  { %v1964_v3 = vpop.f32.mrb[32].mxu0  ;;  %v2005_v42 = vpop.f32.mrb[32].mxu1 }
 0x55d   :  { %v2012_v45 = vadd.f32 %v1964_v3, %v4371_v43  ;;  %v2014_v47 = vadd.f32 %v2005_v42, %v4372_v46  ;;  %v1966_v48 = vpop.f32.mrb[33].mxu0  ;;  %v2007_v49 = vpop.f32.mrb[33].mxu1 }
 0x55e   :  { %v2013_v51 = vadd.f32 %v1966_v48, %v4373_v50  ;;  %v2015_v54 = vadd.f32 %v2007_v49, %v4374_v52  ;;  %v1968_v55 = vpop.f32.mrb[34].mxu0  ;;  %v2009_v56 = vpop.f32.mrb[34].mxu1  ;;  %v4375_v48 = vld [vmem:[#allocation22_spill] sm:$0xff]  ;;  %v4376_v50 = vld [vmem:[#allocation23_spill] sm:$0xff] }
 0x55f   :  { %v3211_v57 = vmul.f32 -1.442695, %v2012_v45  ;;  %v1969_v58 = vpop.f32.mrb[35].mxu0  ;;  %v2010_v59 = vpop.f32.mrb[35].mxu1  ;;  %v4377_v55 = vld [vmem:[#allocation24_spill] sm:$0xff] }
 0x560   :  { %v3212_v60 = vmul.f32 -1.442695, %v2013_v51  ;;  %v3213_v61 = vmul.f32 -1.442695, %v2015_v54 }
 0x561   :  { %3542 = vpow2.f32 %v3211_v57  ;;  %v4378_v57 = vld [vmem:[#allocation25_spill] sm:$0xff] }
 0x562   :  { %3544 = vpow2.f32 %v3212_v60 }
 0x563   :  { %3546 = vpow2.f32 %v3213_v61 }
 0x564   :  { %3548 = vtanh.f32 %v2014_v47 }
 0x56b   :  { %v3543_v63 = vpop.eup %3542 }
 0x56c   :  { %v3545_v1 = vpop.eup %3544  ;;  %v2019_v2 = vadd.f32 1.0, %v3543_v63 }
 0x56d   :  { %v2025_v4 = vadd.f32 1.0, %v3545_v1  ;;  %v3547_v5 = vpop.eup %3546 }
 0x56e   :  { %3550 = vrcp.f32 %v2019_v2  ;;  %v3549_v31 = vpop.eup %3548  ;;  %v2032_v40 = vadd.f32 1.0, %v3547_v5 }
 0x56f   :  { %3552 = vrcp.f32 %v2025_v4 }
 0x570   :  { %3554 = vrcp.f32 %v2032_v40 }
 0x578   :  { %v3551_v35 = vpop.eup %3550 }
 0x579   :  { %v3553_v38 = vpop.eup %3552  ;;  %v2036_v39 = vmul.f32 %v3551_v35, %v3549_v31 }
 0x57a   :  { %v2035_v41 = vmul.f32 %v3553_v38, %v4197_v37  ;;  %v3555_v42 = vpop.eup %3554 }
 0x57c   :  { %v4239_v3 = vadd.f32 %v2036_v39, %v2035_v41 }
 0x57e   :  { %3556 = vtanh.f32 %v4239_v3 }
 0x588   :  { %v3557_v43 = vpop.eup %3556 }
 0x589   :  { %v2039_v45 = vmul.f32 %v3557_v43, %v3555_v42 }
 0x58b   :  { %2041 = vst [vmem:[#allocation9 + $0x20] sm:$0xff] %v2039_v45  ;;  %v2049_v46 = vpack.c.bf16 %v2039_v45, %v2039_v45 }
 0x58d   :  { %2275 = vmatmul.mubr.bf16.vlgmr.msra.gmra.mrb[36].mxu0 %v2049_v46  ;;  %2316 = vmatmul.mubr.bf16.vlgmr.msra.gmra.mrb[36].mxu1 %v2049_v46 }
 0x58e   :  { %2555 = vmatpush1.bf16.msra.mxu0 %v4098_v7  ;;  %2596 = vmatpush1.bf16.msra.mxu1 %v4100_v11 }
 0x58f   :  { %2556 = vmatprep.subr.bf16.mxu0 %v4106_v22  ;;  %2597 = vmatprep.subr.bf16.mxu1 %v4108_v30 }
 0x590   :  { %2586 = vmatprep.mubr.bf16.mxu0 %v4365_v29  ;;  %2627 = vmatprep.mubr.bf16.mxu1 %v4365_v29 }
 0x592   :  { %2557 = vmatpush1.bf16.msra.mxu0 %v4110_v14  ;;  %2598 = vmatpush1.bf16.msra.mxu1 %v4112_v13 }
 0x593   :  { %2558 = vmatprep.subr.bf16.mxu0 %v4118_v15  ;;  %2599 = vmatprep.subr.bf16.mxu1 %v4120_v17 }
 0x596   :  { %2559 = vmatpush1.bf16.msra.mxu0 %v4122_v16  ;;  %2600 = vmatpush1.bf16.msra.mxu1 %v4124_v18 }
 0x597   :  { %2560 = vmatprep.subr.bf16.mxu0 %v4130_v0  ;;  %2601 = vmatprep.subr.bf16.mxu1 %v4132_v33 }
 0x59a   :  { %2561 = vmatpush1.bf16.msra.mxu0 %v4134_v34  ;;  %2602 = vmatpush1.bf16.msra.mxu1 %v4136_v19 }
 0x59b   :  { %2562 = vmatprep.subr.bf16.mxu0 %v4142_v20  ;;  %2603 = vmatprep.subr.bf16.mxu1 %v4144_v23 }
 0x59e   :  { %2563 = vmatpush1.bf16.msra.mxu0 %v4146_v25  ;;  %2604 = vmatpush1.bf16.msra.mxu1 %v4148_v27 }
 0x59f   :  { %2564 = vmatprep.subr.bf16.mxu0 %v4152_v26  ;;  %2605 = vmatprep.subr.bf16.mxu1 %v4160_v44 }
 0x5a2   :  { %2565 = vmatpush1.bf16.msra.mxu0 %v4156_v28  ;;  %2606 = vmatpush1.bf16.msra.mxu1 %v4158_v8 }
 0x5a3   :  { %2566 = vmatprep.subr.bf16.mxu0 %v4163_v24  ;;  %2607 = vmatprep.subr.bf16.mxu1 %v4165_v10 }
 0x5a6   :  { %2567 = vmatpush1.bf16.msra.mxu0 %v4170_v32  ;;  %2608 = vmatpush1.bf16.msra.mxu1 %v4172_v9 }
 0x5a7   :  { %2568 = vmatprep.subr.bf16.mxu0 %v4176_v21  ;;  %2609 = vmatprep.subr.bf16.mxu1 %v4178_v12 }
 0x5aa   :  { %2569 = vmatpush1.bf16.msra.mxu0 %v4182_v62  ;;  %2610 = vmatpush1.bf16.msra.mxu1 %v4184_v36 }
 0x5ab   :  { %2866 = vmatprep.subr.bf16.mxu0 %v4094_v53  ;;  %2907 = vmatprep.subr.bf16.mxu1 %v4096_v6 }
 0x660   :  { %v2276_v37 = vpop.f32.mrb[36].mxu0  ;;  %v2317_v47 = vpop.f32.mrb[36].mxu1 }
 0x661   :  { %v2324_v49 = vadd.f32 %v2276_v37, %v4375_v48  ;;  %v2326_v51 = vadd.f32 %v2317_v47, %v4376_v50  ;;  %v2278_v52 = vpop.f32.mrb[37].mxu0  ;;  %v2319_v54 = vpop.f32.mrb[37].mxu1 }
 0x662   :  { %v2325_v56 = vadd.f32 %v2278_v52, %v4377_v55  ;;  %v2327_v58 = vadd.f32 %v2319_v54, %v4378_v57  ;;  %v2280_v59 = vpop.f32.mrb[38].mxu0  ;;  %v2321_v60 = vpop.f32.mrb[38].mxu1  ;;  %v4383_v55 = vld [vmem:[#allocation30_spill] sm:$0xff]  ;;  %v4384_v57 = vld [vmem:[#allocation31_spill] sm:$0xff] }
 0x663   :  { %v3246_v61 = vmul.f32 -1.442695, %v2324_v49  ;;  %v2281_v63 = vpop.f32.mrb[39].mxu0  ;;  %v2322_v1 = vpop.f32.mrb[39].mxu1 }
 0x664   :  { %v3247_v53 = vmul.f32 -1.442695, %v2325_v56  ;;  %v3248_v6 = vmul.f32 -1.442695, %v2327_v58  ;;  %v4386_v1 = vld [vmem:[#allocation33_spill] sm:$0xff] }
 0x665   :  { %3558 = vpow2.f32 %v3246_v61  ;;  %v4385_v61 = vld [vmem:[#allocation32_spill] sm:$0xff] }
 0x666   :  { %3560 = vpow2.f32 %v3247_v53 }
 0x667   :  { %3562 = vpow2.f32 %v3248_v6 }
 0x668   :  { %3564 = vtanh.f32 %v2326_v51 }
 0x66f   :  { %v3559_v2 = vpop.eup %3558 }
 0x670   :  { %v3561_v4 = vpop.eup %3560  ;;  %v2331_v5 = vadd.f32 1.0, %v3559_v2 }
 0x671   :  { %v2337_v31 = vadd.f32 1.0, %v3561_v4  ;;  %v3563_v35 = vpop.eup %3562 }
 0x672   :  { %3566 = vrcp.f32 %v2331_v5  ;;  %v3565_v38 = vpop.eup %3564  ;;  %v2344_v42 = vadd.f32 1.0, %v3563_v35 }
 0x673   :  { %3568 = vrcp.f32 %v2337_v31 }
 0x674   :  { %3570 = vrcp.f32 %v2344_v42 }
 0x67c   :  { %v3567_v39 = vpop.eup %3566 }
 0x67d   :  { %v3569_v40 = vpop.eup %3568  ;;  %v2348_v41 = vmul.f32 %v3567_v39, %v3565_v38 }
 0x67e   :  { %v2347_v43 = vmul.f32 %v3569_v40, %v4239_v3  ;;  %v3571_v46 = vpop.eup %3570 }
 0x680   :  { %v4281_v45 = vadd.f32 %v2348_v41, %v2347_v43 }
 0x682   :  { %3572 = vtanh.f32 %v4281_v45 }
 0x68c   :  { %v3573_v37 = vpop.eup %3572 }
 0x68d   :  { %v2351_v47 = vmul.f32 %v3573_v37, %v3571_v46 }
 0x68f   :  { %2353 = vst [vmem:[#allocation9 + $0x28] sm:$0xff] %v2351_v47  ;;  %v2361_v48 = vpack.c.bf16 %v2351_v47, %v2351_v47 }
 0x691   :  { %2587 = vmatmul.mubr.bf16.vlgmr.msra.gmra.mrb[40].mxu0 %v2361_v48  ;;  %2628 = vmatmul.mubr.bf16.vlgmr.msra.gmra.mrb[40].mxu1 %v2361_v48 }
 0x692   :  { %2867 = vmatpush1.bf16.msra.mxu0 %v4098_v7  ;;  %2908 = vmatpush1.bf16.msra.mxu1 %v4100_v11  ;;  %v4379_v11 = vld [vmem:[#allocation26_spill] sm:$0xff] }
 0x693   :  { %2868 = vmatprep.subr.bf16.mxu0 %v4106_v22  ;;  %2909 = vmatprep.subr.bf16.mxu1 %v4108_v30  ;;  %v4380_v30 = vld [vmem:[#allocation27_spill] sm:$0xff] }
 0x694   :  { %2898 = vmatprep.mubr.bf16.mxu0 %v4365_v29  ;;  %2939 = vmatprep.mubr.bf16.mxu1 %v4365_v29 }
 0x696   :  { %2869 = vmatpush1.bf16.msra.mxu0 %v4110_v14  ;;  %2910 = vmatpush1.bf16.msra.mxu1 %v4112_v13 }
 0x697   :  { %2870 = vmatprep.subr.bf16.mxu0 %v4118_v15  ;;  %2911 = vmatprep.subr.bf16.mxu1 %v4120_v17  ;;  %v4381_v17 = vld [vmem:[#allocation28_spill] sm:$0xff] }
 0x69a   :  { %2871 = vmatpush1.bf16.msra.mxu0 %v4122_v16  ;;  %2912 = vmatpush1.bf16.msra.mxu1 %v4124_v18  ;;  %v4382_v18 = vld [vmem:[#allocation29_spill] sm:$0xff] }
 0x69b   :  { %2872 = vmatprep.subr.bf16.mxu0 %v4130_v0  ;;  %2913 = vmatprep.subr.bf16.mxu1 %v4132_v33 }
 0x69e   :  { %2873 = vmatpush1.bf16.msra.mxu0 %v4134_v34  ;;  %2914 = vmatpush1.bf16.msra.mxu1 %v4136_v19 }
 0x69f   :  { %2874 = vmatprep.subr.bf16.mxu0 %v4142_v20  ;;  %2915 = vmatprep.subr.bf16.mxu1 %v4144_v23 }
 0x6a2   :  { %2875 = vmatpush1.bf16.msra.mxu0 %v4146_v25  ;;  %2916 = vmatpush1.bf16.msra.mxu1 %v4148_v27 }
 0x6a3   :  { %2876 = vmatprep.subr.bf16.mxu0 %v4152_v26  ;;  %2917 = vmatprep.subr.bf16.mxu1 %v4160_v44 }
 0x6a6   :  { %2877 = vmatpush1.bf16.msra.mxu0 %v4156_v28  ;;  %2918 = vmatpush1.bf16.msra.mxu1 %v4158_v8 }
 0x6a7   :  { %2878 = vmatprep.subr.bf16.mxu0 %v4163_v24  ;;  %2919 = vmatprep.subr.bf16.mxu1 %v4165_v10 }
 0x6aa   :  { %2879 = vmatpush1.bf16.msra.mxu0 %v4170_v32  ;;  %2920 = vmatpush1.bf16.msra.mxu1 %v4172_v9 }
 0x6ab   :  { %2880 = vmatprep.subr.bf16.mxu0 %v4176_v21  ;;  %2921 = vmatprep.subr.bf16.mxu1 %v4178_v12 }
 0x6ae   :  { %2881 = vmatpush1.bf16.msra.mxu0 %v4182_v62  ;;  %2922 = vmatpush1.bf16.msra.mxu1 %v4184_v36 }
 0x764   :  { %v2588_v29 = vpop.f32.mrb[40].mxu0  ;;  %v2629_v7 = vpop.f32.mrb[40].mxu1 }
 0x765   :  { %v2636_v22 = vadd.f32 %v2588_v29, %v4379_v11  ;;  %v2638_v14 = vadd.f32 %v2629_v7, %v4380_v30  ;;  %v2590_v13 = vpop.f32.mrb[41].mxu0  ;;  %v2631_v15 = vpop.f32.mrb[41].mxu1 }
 0x766   :  { %v2637_v16 = vadd.f32 %v2590_v13, %v4381_v17  ;;  %v2639_v0 = vadd.f32 %v2631_v15, %v4382_v18  ;;  %v2592_v33 = vpop.f32.mrb[42].mxu0  ;;  %v2633_v34 = vpop.f32.mrb[42].mxu1 }
 0x767   :  { %v3281_v19 = vmul.f32 -1.442695, %v2636_v22  ;;  %v2593_v20 = vpop.f32.mrb[43].mxu0  ;;  %v2634_v23 = vpop.f32.mrb[43].mxu1 }
 0x768   :  { %v3282_v25 = vmul.f32 -1.442695, %v2637_v16  ;;  %v3283_v27 = vmul.f32 -1.442695, %v2639_v0 }
 0x769   :  { %3574 = vpow2.f32 %v3281_v19 }
 0x76a   :  { %3576 = vpow2.f32 %v3282_v25 }
 0x76b   :  { %3578 = vpow2.f32 %v3283_v27 }
 0x76c   :  { %3580 = vtanh.f32 %v2638_v14 }
 0x773   :  { %v3575_v26 = vpop.eup %3574 }
 0x774   :  { %v3577_v28 = vpop.eup %3576  ;;  %v2643_v8 = vadd.f32 1.0, %v3575_v26 }
 0x775   :  { %v2649_v44 = vadd.f32 1.0, %v3577_v28  ;;  %v3579_v24 = vpop.eup %3578 }
 0x776   :  { %3582 = vrcp.f32 %v2643_v8  ;;  %v3581_v10 = vpop.eup %3580  ;;  %v2656_v12 = vadd.f32 1.0, %v3579_v24 }
 0x777   :  { %3584 = vrcp.f32 %v2649_v44 }
 0x778   :  { %3586 = vrcp.f32 %v2656_v12 }
 0x780   :  { %v3583_v32 = vpop.eup %3582 }
 0x781   :  { %v3585_v9 = vpop.eup %3584  ;;  %v2660_v21 = vmul.f32 %v3583_v32, %v3581_v10 }
 0x782   :  { %v2659_v62 = vmul.f32 %v3585_v9, %v4281_v45  ;;  %v3587_v3 = vpop.eup %3586 }
 0x784   :  { %v2661_v36 = vadd.f32 %v2660_v21, %v2659_v62 }
 0x786   :  { %3588 = vtanh.f32 %v2661_v36 }
 0x790   :  { %v3589_v49 = vpop.eup %3588 }
 0x791   :  { %v2663_v50 = vmul.f32 %v3589_v49, %v3587_v3 }
 0x793   :  { %2665 = vst [vmem:[#allocation9 + $0x30] sm:$0xff] %v2663_v50  ;;  %v2673_v51 = vpack.c.bf16 %v2663_v50, %v2663_v50 }
 0x795   :  { %2899 = vmatmul.mubr.bf16.vlgmr.msra.gmra.mrb[44].mxu0 %v2673_v51  ;;  %2940 = vmatmul.mubr.bf16.vlgmr.msra.gmra.mrb[44].mxu1 %v2673_v51 }
 0x868   :  { %v2900_v52 = vpop.f32.mrb[44].mxu0  ;;  %v2941_v54 = vpop.f32.mrb[44].mxu1 }
 0x869   :  { %v2948_v56 = vadd.f32 %v2900_v52, %v4383_v55  ;;  %v2950_v58 = vadd.f32 %v2941_v54, %v4384_v57  ;;  %v2902_v59 = vpop.f32.mrb[45].mxu0  ;;  %v2943_v60 = vpop.f32.mrb[45].mxu1 }
 0x86a   :  { %v2949_v63 = vadd.f32 %v2902_v59, %v4385_v61  ;;  %v2951_v53 = vadd.f32 %v2943_v60, %v4386_v1  ;;  %v2904_v6 = vpop.f32.mrb[46].mxu0  ;;  %v2945_v2 = vpop.f32.mrb[46].mxu1 }
 0x86b   :  { %v3316_v4 = vmul.f32 -1.442695, %v2948_v56  ;;  %v2905_v5 = vpop.f32.mrb[47].mxu0  ;;  %v2946_v31 = vpop.f32.mrb[47].mxu1 }
 0x86c   :  { %v3317_v35 = vmul.f32 -1.442695, %v2949_v63  ;;  %v3318_v38 = vmul.f32 -1.442695, %v2951_v53 }
 0x86d   :  { %3590 = vpow2.f32 %v3316_v4 }
 0x86e   :  { %3592 = vpow2.f32 %v3317_v35 }
 0x86f   :  { %3594 = vpow2.f32 %v3318_v38 }
 0x870   :  { %3596 = vtanh.f32 %v2950_v58 }
 0x877   :  { %v3591_v39 = vpop.eup %3590 }
 0x878   :  { %v3593_v40 = vpop.eup %3592  ;;  %v2955_v41 = vadd.f32 1.0, %v3591_v39 }
 0x879   :  { %v2961_v42 = vadd.f32 1.0, %v3593_v40  ;;  %v3595_v43 = vpop.eup %3594 }
 0x87a   :  { %3598 = vrcp.f32 %v2955_v41  ;;  %v3597_v45 = vpop.eup %3596  ;;  %v2968_v48 = vadd.f32 1.0, %v3595_v43 }
 0x87b   :  { %3600 = vrcp.f32 %v2961_v42 }
 0x87c   :  { %3602 = vrcp.f32 %v2968_v48 }
 0x884   :  { %v3599_v46 = vpop.eup %3598 }
 0x885   :  { %v3601_v37 = vpop.eup %3600  ;;  %v2972_v47 = vmul.f32 %v3599_v46, %v3597_v45 }
 0x886   :  { %v2971_v29 = vmul.f32 %v3601_v37, %v2661_v36  ;;  %v3603_v11 = vpop.eup %3602 }
 0x888   :  { %v2973_v7 = vadd.f32 %v2972_v47, %v2971_v29 }
 0x88a   :  { %3604 = vtanh.f32 %v2973_v7 }
 0x894   :  { %v3605_v22 = vpop.eup %3604 }
 0x895   :  { %v2975_v30 = vmul.f32 %v3605_v22, %v3603_v11 }
 0x897   :  { %2977 = vst [vmem:[#allocation9 + $0x38] sm:$0xff] %v2975_v30 }
 0x898   :  { %3683 = shalt.err (!%p3680_p0)
}
 0x899   :  { %s3684_s6 = scalar_lea.hbm %s4341_s4, 1024 }
 0x89a   :  { %p3685_p1 = scmp.ne.s32.totalorder %s4341_s4, %s3684_s6  ;;  %p3688_p2 = scmp.lt.u32.totalorder %s3684_s6, %s4341_s4 }
 0x89c   :  { %p3690_p3 = pnand %p3688_p2, %p3685_p1 }
 0x89e   :  { %3693 = shalt.err (!%p3690_p3)
}
 0x89f   :  { %s3709_s11 = smov 128   ;;  %s3710_s12 = smov 8  }
 0x8a0   :  { %2989 = dma.vmem_to_hbm [thread:$0]  %s2984_s26, 1024, %s4341_s4, [#allocation5], %s3709_s11, %s3709_s11, %s3710_s12  }
 0x8a1   :  { %3698 = dma.done.wait [#allocation5], 1024  }
 0x8a2   :  { %3699 = vsyncadd [#allocation5], 4294966272 }
 0x8a3   :  { %2993 = vsyncpa [#allocation4], 1 }
 0x8a4   :  { %2994 = vsyncpa [#allocation7], 1 }
 0x8a5   :  { %2995 = vsyncpa [#allocation5], 1 }

</bundles_post_ra>
